<compile_context>
chip_gen: v6e
topology: v6e:2x2x1
jax: 0.10.0
libtpu: 0.0.40
codegen_flags: <defaults>
</compile_context>

<pallas_src>
import functools

import jax
import jax.numpy as jnp
from jax.experimental import pallas as pl
from jax.experimental.pallas import tpu as pltpu


# --------------------------------------------------------------------------- #
# Kernel
# --------------------------------------------------------------------------- #
def _select_k_groups_fc_kernel(
    x_ref,        # [tm, H]   input rows (folded: tm = k*BS rows spanning k groups)
    base_fc_ref,  # [rows_per_group, H] f32: precomputed base @ W2^T + bfc rows
    rw_ref,       # [R, H, H] resnet weights, pre-transposed (in, out), compute dtype
    rb_ref,       # [R, 1, H] resnet biases, f32
    w1_ref,       # [H, H]    fc weight first half, pre-transposed (in, out)
    o_ref,        # [tm, H]
    *,
    resnet_num: int,
    rows_per_group: int,
):
    cdt = rw_ref.dtype  # MXU operand dtype (bf16-ready); accumulate in f32.

    # Keep the running residual in f32 across ResBlocks; cast only the MXU operand.
    x32 = x_ref[...].astype(jnp.float32)
    for i in range(resnet_num):  # R is small; static unroll
        h = jnp.dot(x32.astype(cdt), rw_ref[i], preferred_element_type=jnp.float32)
        h = h + rb_ref[i]                       # (1,H) f32 broadcast over rows
        x32 = x32 + h * jax.nn.sigmoid(h)       # SiLU + residual, all f32 (EUP sigmoid)

    # Group-dependent half of the fc; the base half was hoisted to the wrapper.
    y = jnp.dot(x32.astype(cdt), w1_ref[...], preferred_element_type=jnp.float32)

    tm = y.shape[0]
    base_fc = base_fc_ref[...]
    if rows_per_group == tm:
        o_ref[...] = (y + base_fc).astype(o_ref.dtype)
    else:
        # Folded tile spans tm // rows_per_group groups; base_fc repeats per group.
        for kk in range(tm // rows_per_group):
            sl = slice(kk * rows_per_group, (kk + 1) * rows_per_group)
            o_ref[sl, :] = (y[sl, :] + base_fc).astype(o_ref.dtype)


# --------------------------------------------------------------------------- #
# Helpers
# --------------------------------------------------------------------------- #
def _sublane(dtype):
    return {4: 8, 2: 16, 1: 32}.get(jnp.dtype(dtype).itemsize, 8)


def _vmem_capacity_bytes():
    """Generation-aware VMEM size (128 MiB on v5e/v6e, 64 MiB/TC on v7x)."""
    try:
        return int(pltpu.get_tpu_info().vmem_capacity_bytes)
    except Exception:
        return 64 << 20  # conservative fallback


def _pick_tm(bs, sub, cap):
    """Largest row tile <= cap dividing bs; prefer multiples of 128, else sublane."""
    cap = max(sub, min(int(cap), bs))
    for align in (128, sub):
        t = cap - cap % align
        while t >= align:
            if bs % t == 0:
                return t
            t -= align
    return bs  # full row axis is always a legal block shape


# --------------------------------------------------------------------------- #
# Param preparation (done ONCE, hoisted out of the per-call wrapper)
# --------------------------------------------------------------------------- #
def prepare_params(params, compute_dtype):
    """Pre-transpose / reshape module parameters for the kernel layout."""
    R, H, _ = params["resnet_w"].shape
    wfc = params["fc_w"]                                   # [H, 2H]
    return {
        "rw_t": jnp.transpose(params["resnet_w"], (0, 2, 1)).astype(compute_dtype),  # [R,H,H]
        "rb": params["resnet_b"].reshape(R, 1, H).astype(jnp.float32),               # [R,1,H]
        "w1_t": jnp.transpose(wfc[:, :H]).astype(compute_dtype),                     # [H,H]
        "w2_t": jnp.transpose(wfc[:, H:]).astype(compute_dtype),                     # [H,H]
        "bfc": params["fc_b"].reshape(1, H).astype(jnp.float32),                     # [1,H]
    }


# --------------------------------------------------------------------------- #
# Wrapper
# --------------------------------------------------------------------------- #
def select_k_groups_fc(all_hidden_states, base_hidden_states, prepared, *, tm=None):
    """all_hidden_states: [G, B, S, H], base_hidden_states: [B, S, H]."""
    G, B, S, H = all_hidden_states.shape
    BS = B * S
    M = G * BS
    dtype = all_hidden_states.dtype
    wdt = prepared["rw_t"].dtype
    R = prepared["rw_t"].shape[0]
    assert R >= 1, "resnet_num must be >= 1"
    in_isz = jnp.dtype(dtype).itemsize
    w_isz = jnp.dtype(wdt).itemsize
    sub = _sublane(dtype)
    # note: H not a multiple of 128 still works but stores become masked (perf cliff).

    # ---- Hoisted group-invariant fc half: base_fc = base @ Wfc[:,H:]^T + bfc ----
    base2 = base_hidden_states.reshape(BS, H)
    base_fc = jnp.dot(base2.astype(wdt), prepared["w2_t"],
                      preferred_element_type=jnp.float32,
                      precision=jax.lax.Precision.HIGHEST) + prepared["bfc"]  # [BS,H] f32

    # ---- Generation-aware VMEM budget ----
    vmem_cap = _vmem_capacity_bytes()
    budget = int(0.8 * vmem_cap)
    weight_bytes = ((prepared["rw_t"].size + prepared["w1_t"].size) * w_isz
                    + prepared["rb"].size * 4)
    # TODO(synk): when (R+1)*H^2 weights no longer fit VMEM-resident (large H on v7x's
    # 64 MiB/TC), stream them via memory_space=pl.ANY + an inner emit_pipeline instead.

    def per_row_bytes(fold):
        b = 2 * H * in_isz          # x tile, double-buffered
        b += 2 * H * in_isz         # out tile, double-buffered
        if not fold:
            b += 2 * H * 4          # base_fc row tile (f32), double-buffered
        b += 4 * H * 4              # f32 temporaries (x32, h, y, slack)
        b += H * w_isz              # cast MXU operand copy
        return b

    def tm_budget(fold):
        avail = budget - 2 * weight_bytes - (2 * BS * H * 4 if fold else 0)
        return max(sub, min(1024, avail // per_row_bytes(fold)))

    # ---- Fold the group axis into the row axis when BS is small (fills MXU M) ----
    fold = False
    fold_k = 1
    if tm is None and G > 1 and BS < 256 and BS % sub == 0:
        cap = tm_budget(True)
        ks = [d for d in range(G, 0, -1) if G % d == 0 and BS * d <= cap]
        if ks and ks[0] > 1:
            # Prefer >=2 grid steps (megacore) only if a full-height (>=256 row) tile remains.
            multi = [d for d in ks if G // d >= 2 and BS * d >= 256]
            fold_k = multi[0] if multi else ks[0]
            fold = fold_k > 1

    if fold:
        tm = BS * fold_k
        grid = (M // tm,)
        x_in = all_hidden_states.reshape(M, H)
        rows_per_group = BS
        out_shape = jax.ShapeDtypeStruct((M, H), dtype)
        sem = ("parallel",)
    else:
        if tm is None:
            tm = _pick_tm(BS, sub, tm_budget(False))
        assert BS % tm == 0, "row tile tm must divide B*S"
        assert tm % sub == 0 or tm == BS, f"tm must be a multiple of {sub} (or equal B*S)"
        grid = (BS // tm, G)   # row tiles outer, groups inner: base_fc reused across g
        x_in = all_hidden_states.reshape(G, BS, H)
        rows_per_group = tm
        out_shape = jax.ShapeDtypeStruct((G, BS, H), dtype)
        sem = ("parallel", "parallel")

    kernel = functools.partial(_select_k_groups_fc_kernel,
                               resnet_num=R, rows_per_group=rows_per_group)

    footprint = (2 * weight_bytes + tm * per_row_bytes(fold)
                 + (2 * BS * H * 4 if fold else 0) + (4 << 20))
    vmem_limit = int(min(max(footprint, 32 << 20), int(0.9 * vmem_cap)))

    cost = pl.CostEstimate(
        flops=2 * M * H * H * (R + 1),
        transcendentals=M * H * R,
        bytes_accessed=2 * M * H * in_isz + BS * H * 4 + weight_bytes,
    )

    def build_specs(single_buffer):
        const_kw = {}
        if single_buffer and hasattr(pl, "Buffered"):
            const_kw = {"pipeline_mode": pl.Buffered(1)}

        def const_spec(shape, imap):
            # Constant-index blocks are DMA'd once; single-buffer them when supported.
            try:
                return pl.BlockSpec(shape, imap, **const_kw)
            except TypeError:
                return pl.BlockSpec(shape, imap)

        if fold:
            in_specs = [
                pl.BlockSpec((tm, H), lambda j: (j, 0)),               # x rows (folded)
                const_spec((BS, H), lambda j: (0, 0)),                 # base_fc (resident)
                const_spec((R, H, H), lambda j: (0, 0, 0)),            # resnet W^T
                const_spec((R, 1, H), lambda j: (0, 0, 0)),            # resnet b
                const_spec((H, H), lambda j: (0, 0)),                  # fc W1^T
            ]
            out_spec = pl.BlockSpec((tm, H), lambda j: (j, 0))
        else:
            in_specs = [
                pl.BlockSpec((None, tm, H), lambda j, g: (g, j, 0)),   # x rows (group g)
                pl.BlockSpec((tm, H), lambda j, g: (j, 0)),            # base_fc rows (shared over g)
                const_spec((R, H, H), lambda j, g: (0, 0, 0)),         # resnet W^T
                const_spec((R, 1, H), lambda j, g: (0, 0, 0)),         # resnet b
                const_spec((H, H), lambda j, g: (0, 0)),               # fc W1^T
            ]
            out_spec = pl.BlockSpec((None, tm, H), lambda j, g: (g, j, 0))
        return in_specs, out_spec

    def run(single_buffer):
        in_specs, out_spec = build_specs(single_buffer)
        return pl.pallas_call(
            kernel,
            out_shape=out_shape,
            grid_spec=pltpu.PrefetchScalarGridSpec(
                num_scalar_prefetch=0,
                grid=grid,
                in_specs=in_specs,
                out_specs=out_spec,
            ),
            compiler_params=pltpu.CompilerParams(
                dimension_semantics=sem,
                vmem_limit_bytes=vmem_limit,
            ),
            cost_estimate=cost,
        )(x_in, base_fc, prepared["rw_t"], prepared["rb"], prepared["w1_t"])

    try:
        out = run(True)
    except Exception:
        # Older jax without pipeline_mode / single-buffer support: default buffering.
        out = run(False)

    return out.reshape(G, B, S, H)


# --------------------------------------------------------------------------- #
# Params / reference
# --------------------------------------------------------------------------- #
def init_params(key, num_group, top_k_group, hidden_size, resnet_num):
    """Synthetic parameters matching the PyTorch module's shapes.

    Note: PyTorch zero-inits the ResBlock weights (nn.init.zeros_); here we use
    small random values so the resnet matmul path is numerically exercised.
    """
    k_fc_w, k_fc_b, k_rw, k_rb, k_sel = jax.random.split(key, 5)
    resnet_w = 0.02 * jax.random.normal(
        k_rw, (resnet_num, hidden_size, hidden_size), jnp.float32)
    resnet_b = 0.02 * jax.random.normal(k_rb, (resnet_num, hidden_size), jnp.float32)
    fc_w = 0.02 * jax.random.normal(k_fc_w, (hidden_size, 2 * hidden_size), jnp.float32)
    fc_b = 0.02 * jax.random.normal(k_fc_b, (hidden_size,), jnp.float32)
    sel_w = 0.02 * jax.random.normal(k_sel, (top_k_group, num_group), jnp.float32)
    return {
        "resnet_w": resnet_w,
        "resnet_b": resnet_b,
        "fc_w": fc_w,
        "fc_b": fc_b,
        "selection_w": sel_w,  # unused in forward (kept for shape fidelity)
    }


def _reference(all_hidden_states, base_hidden_states, params):
    """Pure-JAX f32 reference (HIGHEST matmul precision)."""
    hp = jax.lax.Precision.HIGHEST
    x = all_hidden_states.astype(jnp.float32)
    R = params["resnet_w"].shape[0]
    for i in range(R):
        h = jnp.einsum("gbsh,oh->gbso", x, params["resnet_w"][i].astype(jnp.float32),
                       precision=hp) + params["resnet_b"][i]
        x = x + h * jax.nn.sigmoid(h)
    base = jnp.broadcast_to(base_hidden_states[None].astype(jnp.float32), x.shape)
    cat = jnp.concatenate([x, base], axis=-1)
    y = jnp.einsum("gbsc,oc->gbso", cat, params["fc_w"].astype(jnp.float32),
                   precision=hp) + params["fc_b"]
    return y.astype(all_hidden_states.dtype)


# --------------------------------------------------------------------------- #
# Demo / test
# --------------------------------------------------------------------------- #
if __name__ == "__main__":
    # Small shapes consistent with the module's forward:
    #   all_hidden_states: [num_group, batch, seq, hidden], base: [batch, seq, hidden]
    # hidden=128 keeps the output lane-dense (multiple of 128).
    num_group, top_k_group, hidden_size, resnet_num = 4, 2, 128, 2
    batch, seq = 2, 8

    key = jax.random.PRNGKey(0)
    k_all, k_base, k_params = jax.random.split(key, 3)
    all_hidden_states = jax.random.normal(
        k_all, (num_group, batch, seq, hidden_size), jnp.float32)
    base_hidden_states = jax.random.normal(
        k_base, (batch, seq, hidden_size), jnp.float32)
    params = init_params(k_params, num_group, top_k_group, hidden_size, resnet_num)

    ref = _reference(all_hidden_states, base_hidden_states, params)

    # f32 validation path
    prepared_f32 = prepare_params(params, jnp.float32)
    out = select_k_groups_fc(all_hidden_states, base_hidden_states, prepared_f32)
    out = jax.block_until_ready(out)
    assert out.shape == (num_group, batch, seq, hidden_size)
    err = float(jnp.max(jnp.abs(out - ref)))
    assert jnp.allclose(out, ref, atol=1e-4, rtol=1e-4), f"f32 max abs err {err}"

    # bf16 production path (MXU-native operands, f32 accumulation + f32 residual)
    prepared_bf16 = prepare_params(params, jnp.bfloat16)
    out_bf = select_k_groups_fc(all_hidden_states.astype(jnp.bfloat16),
                                base_hidden_states.astype(jnp.bfloat16),
                                prepared_bf16)
    out_bf = jax.block_until_ready(out_bf)
    err_bf = float(jnp.max(jnp.abs(out_bf.astype(jnp.float32) - ref)))
    assert jnp.allclose(out_bf.astype(jnp.float32), ref, atol=5e-2, rtol=5e-2), \
        f"bf16 max abs err {err_bf}"

    print("KERNEL_OK")
</pallas_src>

<mosaic_0001>
module attributes {stable_mosaic.version = 11 : i64} {
  func.func @_select_k_groups_fc_kernel(%arg0: i32, %arg1: memref<64x128xf32, #tpu.memory_space<vmem>>, %arg2: memref<16x128xf32, #tpu.memory_space<vmem>>, %arg3: memref<2x128x128xf32, #tpu.memory_space<vmem>>, %arg4: memref<2x1x128xf32, #tpu.memory_space<vmem>>, %arg5: memref<128x128xf32, #tpu.memory_space<vmem>>, %arg6: memref<64x128xf32, #tpu.memory_space<vmem>>) attributes {dimension_semantics = [#tpu.dimension_semantics<parallel>], iteration_bounds = array<i64: 1>, scalar_prefetch = 0 : i64, scratch_operands = 0 : i64, tpu.core_type = #tpu.core_type<tc>, window_params = [{transform_indices = @transform_0, window_bounds = array<i64: 64, 128>}, {pipeline_mode = #tpu.pipeline_mode<synchronous>, transform_indices = @transform_1, window_bounds = array<i64: 16, 128>}, {pipeline_mode = #tpu.pipeline_mode<synchronous>, transform_indices = @transform_2, window_bounds = array<i64: 2, 128, 128>}, {pipeline_mode = #tpu.pipeline_mode<synchronous>, transform_indices = @transform_3, window_bounds = array<i64: 2, 1, 128>}, {pipeline_mode = #tpu.pipeline_mode<synchronous>, transform_indices = @transform_4, window_bounds = array<i64: 128, 128>}, {transform_indices = @transform_5, window_bounds = array<i64: 64, 128>}]} {
    %c0 = arith.constant 0 : index
    %c0_0 = arith.constant 0 : index
    %0 = vector.load %arg1[%c0, %c0_0] : memref<64x128xf32, #tpu.memory_space<vmem>>, vector<64x128xf32>
    %c0_1 = arith.constant 0 : index
    %c0_2 = arith.constant 0 : index
    %c0_3 = arith.constant 0 : index
    %1 = vector.load %arg3[%c0_1, %c0_2, %c0_3] : memref<2x128x128xf32, #tpu.memory_space<vmem>>, vector<1x128x128xf32>
    %2 = vector.shape_cast %1 : vector<1x128x128xf32> to vector<128x128xf32>
    %cst = arith.constant dense<0.000000e+00> : vector<64x128xf32>
    %3 = tpu.matmul %0, %2, %cst {dimension_numbers = #tpu.dot_dimension_numbers<[1], [0], [0], [1], [0, 0, 1, 1], [], []>} : vector<64x128xf32>, vector<128x128xf32>, vector<64x128xf32> -> vector<64x128xf32>
    %c0_4 = arith.constant 0 : index
    %c0_5 = arith.constant 0 : index
    %c0_6 = arith.constant 0 : index
    %4 = vector.load %arg4[%c0_4, %c0_5, %c0_6] : memref<2x1x128xf32, #tpu.memory_space<vmem>>, vector<1x1x128xf32>
    %5 = vector.shape_cast %4 : vector<1x1x128xf32> to vector<1x128xf32>
    %6 = vector.broadcast %5 : vector<1x128xf32> to vector<64x128xf32>
    %7 = arith.addf %3, %6 : vector<64x128xf32>
    %8 = arith.negf %7 : vector<64x128xf32>
    %9 = math.exp %8 : vector<64x128xf32>
    %cst_7 = arith.constant 1.000000e+00 : f32
    %10 = vector.broadcast %cst_7 : f32 to vector<64x128xf32>
    %11 = arith.addf %10, %9 : vector<64x128xf32>
    %12 = arith.divf %10, %11 : vector<64x128xf32>
    %13 = arith.mulf %7, %12 : vector<64x128xf32>
    %14 = arith.addf %0, %13 : vector<64x128xf32>
    %c1 = arith.constant 1 : index
    %c0_8 = arith.constant 0 : index
    %c0_9 = arith.constant 0 : index
    %15 = vector.load %arg3[%c1, %c0_8, %c0_9] : memref<2x128x128xf32, #tpu.memory_space<vmem>>, vector<1x128x128xf32>
    %16 = vector.shape_cast %15 : vector<1x128x128xf32> to vector<128x128xf32>
    %cst_10 = arith.constant dense<0.000000e+00> : vector<64x128xf32>
    %17 = tpu.matmul %14, %16, %cst_10 {dimension_numbers = #tpu.dot_dimension_numbers<[1], [0], [0], [1], [0, 0, 1, 1], [], []>} : vector<64x128xf32>, vector<128x128xf32>, vector<64x128xf32> -> vector<64x128xf32>
    %c1_11 = arith.constant 1 : index
    %c0_12 = arith.constant 0 : index
    %c0_13 = arith.constant 0 : index
    %18 = vector.load %arg4[%c1_11, %c0_12, %c0_13] : memref<2x1x128xf32, #tpu.memory_space<vmem>>, vector<1x1x128xf32>
    %19 = vector.shape_cast %18 : vector<1x1x128xf32> to vector<1x128xf32>
    %20 = vector.broadcast %19 : vector<1x128xf32> to vector<64x128xf32>
    %21 = arith.addf %17, %20 : vector<64x128xf32>
    %22 = arith.negf %21 : vector<64x128xf32>
    %23 = math.exp %22 : vector<64x128xf32>
    %cst_14 = arith.constant 1.000000e+00 : f32
    %24 = vector.broadcast %cst_14 : f32 to vector<64x128xf32>
    %25 = arith.addf %24, %23 : vector<64x128xf32>
    %26 = arith.divf %24, %25 : vector<64x128xf32>
    %27 = arith.mulf %21, %26 : vector<64x128xf32>
    %28 = arith.addf %14, %27 : vector<64x128xf32>
    %c0_15 = arith.constant 0 : index
    %c0_16 = arith.constant 0 : index
    %29 = vector.load %arg5[%c0_15, %c0_16] : memref<128x128xf32, #tpu.memory_space<vmem>>, vector<128x128xf32>
    %cst_17 = arith.constant dense<0.000000e+00> : vector<64x128xf32>
    %30 = tpu.matmul %28, %29, %cst_17 {dimension_numbers = #tpu.dot_dimension_numbers<[1], [0], [0], [1], [0, 0, 1, 1], [], []>} : vector<64x128xf32>, vector<128x128xf32>, vector<64x128xf32> -> vector<64x128xf32>
    %c0_18 = arith.constant 0 : index
    %c0_19 = arith.constant 0 : index
    %31 = vector.load %arg2[%c0_18, %c0_19] : memref<16x128xf32, #tpu.memory_space<vmem>>, vector<16x128xf32>
    %32 = vector.extract_strided_slice %30 {offsets = [0, 0], sizes = [16, 128], strides = [1, 1]} : vector<64x128xf32> to vector<16x128xf32>
    %33 = arith.addf %32, %31 : vector<16x128xf32>
    %c0_20 = arith.constant 0 : index
    %c0_21 = arith.constant 0 : index
    %34 = vector.load %arg6[%c0_20, %c0_21] : memref<64x128xf32, #tpu.memory_space<vmem>>, vector<16x128xf32>
    tpu.vector_store %arg6[%c0_20, %c0_21], %33 {strides = array<i32>} : memref<64x128xf32, #tpu.memory_space<vmem>>, vector<16x128xf32>,
    %35 = vector.extract_strided_slice %30 {offsets = [16, 0], sizes = [16, 128], strides = [1, 1]} : vector<64x128xf32> to vector<16x128xf32>
    %36 = arith.addf %35, %31 : vector<16x128xf32>
    %c16 = arith.constant 16 : index
    %c0_22 = arith.constant 0 : index
    %37 = vector.load %arg6[%c16, %c0_22] : memref<64x128xf32, #tpu.memory_space<vmem>>, vector<16x128xf32>
    tpu.vector_store %arg6[%c16, %c0_22], %36 {strides = array<i32>} : memref<64x128xf32, #tpu.memory_space<vmem>>, vector<16x128xf32>,
    %38 = vector.extract_strided_slice %30 {offsets = [32, 0], sizes = [16, 128], strides = [1, 1]} : vector<64x128xf32> to vector<16x128xf32>
    %39 = arith.addf %38, %31 : vector<16x128xf32>
    %c32 = arith.constant 32 : index
    %c0_23 = arith.constant 0 : index
    %40 = vector.load %arg6[%c32, %c0_23] : memref<64x128xf32, #tpu.memory_space<vmem>>, vector<16x128xf32>
    tpu.vector_store %arg6[%c32, %c0_23], %39 {strides = array<i32>} : memref<64x128xf32, #tpu.memory_space<vmem>>, vector<16x128xf32>,
    %41 = vector.extract_strided_slice %30 {offsets = [48, 0], sizes = [16, 128], strides = [1, 1]} : vector<64x128xf32> to vector<16x128xf32>
    %42 = arith.addf %41, %31 : vector<16x128xf32>
    %c48 = arith.constant 48 : index
    %c0_24 = arith.constant 0 : index
    %43 = vector.load %arg6[%c48, %c0_24] : memref<64x128xf32, #tpu.memory_space<vmem>>, vector<16x128xf32>
    tpu.vector_store %arg6[%c48, %c0_24], %42 {strides = array<i32>} : memref<64x128xf32, #tpu.memory_space<vmem>>, vector<16x128xf32>,
    return
  }
  func.func @transform_0(%arg0: i32) -> (i32, i32) {
    %c0_i32 = arith.constant 0 : i32
    %c0_i32_0 = arith.constant 0 : i32
    return %arg0, %c0_i32 : i32, i32
  }
  func.func @transform_1(%arg0: i32) -> (i32, i32) {
    %c0_i32 = arith.constant 0 : i32
    %c0_i32_0 = arith.constant 0 : i32
    %c0_i32_1 = arith.constant 0 : i32
    return %c0_i32, %c0_i32_0 : i32, i32
  }
  func.func @transform_2(%arg0: i32) -> (i32, i32, i32) {
    %c0_i32 = arith.constant 0 : i32
    %c0_i32_0 = arith.constant 0 : i32
    %c0_i32_1 = arith.constant 0 : i32
    %c0_i32_2 = arith.constant 0 : i32
    return %c0_i32, %c0_i32_0, %c0_i32_1 : i32, i32, i32
  }
  func.func @transform_3(%arg0: i32) -> (i32, i32, i32) {
    %c0_i32 = arith.constant 0 : i32
    %c0_i32_0 = arith.constant 0 : i32
    %c0_i32_1 = arith.constant 0 : i32
    %c0_i32_2 = arith.constant 0 : i32
    return %c0_i32, %c0_i32_0, %c0_i32_1 : i32, i32, i32
  }
  func.func @transform_4(%arg0: i32) -> (i32, i32) {
    %c0_i32 = arith.constant 0 : i32
    %c0_i32_0 = arith.constant 0 : i32
    %c0_i32_1 = arith.constant 0 : i32
    return %c0_i32, %c0_i32_0 : i32, i32
  }
  func.func @transform_5(%arg0: i32) -> (i32, i32) {
    %c0_i32 = arith.constant 0 : i32
    %c0_i32_0 = arith.constant 0 : i32
    return %arg0, %c0_i32 : i32, i32
  }
}

module attributes {stable_mosaic.version = 11 : i64} {
  func.func @_select_k_groups_fc_kernel(%arg0: i32, %arg1: memref<64x128xf32, #tpu.memory_space<vmem>>, %arg2: memref<16x128xf32, #tpu.memory_space<vmem>>, %arg3: memref<2x128x128xf32, #tpu.memory_space<vmem>>, %arg4: memref<2x1x128xf32, #tpu.memory_space<vmem>>, %arg5: memref<128x128xf32, #tpu.memory_space<vmem>>, %arg6: memref<64x128xf32, #tpu.memory_space<vmem>>) attributes {dimension_semantics = [#tpu.dimension_semantics<parallel>], iteration_bounds = array<i64: 1>, scalar_prefetch = 0 : i64, scratch_operands = 0 : i64, tpu.core_type = #tpu.core_type<tc>, window_params = [{transform_indices = @transform_0, window_bounds = array<i64: 64, 128>}, {pipeline_mode = #tpu.pipeline_mode<synchronous>, transform_indices = @transform_1, window_bounds = array<i64: 16, 128>}, {pipeline_mode = #tpu.pipeline_mode<synchronous>, transform_indices = @transform_2, window_bounds = array<i64: 2, 128, 128>}, {pipeline_mode = #tpu.pipeline_mode<synchronous>, transform_indices = @transform_3, window_bounds = array<i64: 2, 1, 128>}, {pipeline_mode = #tpu.pipeline_mode<synchronous>, transform_indices = @transform_4, window_bounds = array<i64: 128, 128>}, {transform_indices = @transform_5, window_bounds = array<i64: 64, 128>}]} {
    %c0 = arith.constant 0 : index
    %c0_0 = arith.constant 0 : index
    %0 = vector.load %arg1[%c0, %c0_0] : memref<64x128xf32, #tpu.memory_space<vmem>>, vector<64x128xf32>
    %c0_1 = arith.constant 0 : index
    %c0_2 = arith.constant 0 : index
    %c0_3 = arith.constant 0 : index
    %1 = vector.load %arg3[%c0_1, %c0_2, %c0_3] : memref<2x128x128xf32, #tpu.memory_space<vmem>>, vector<1x128x128xf32>
    %2 = vector.shape_cast %1 : vector<1x128x128xf32> to vector<128x128xf32>
    %cst = arith.constant dense<0.000000e+00> : vector<64x128xf32>
    %3 = tpu.matmul %0, %2, %cst {dimension_numbers = #tpu.dot_dimension_numbers<[1], [0], [0], [1], [0, 0, 1, 1], [], []>} : vector<64x128xf32>, vector<128x128xf32>, vector<64x128xf32> -> vector<64x128xf32>
    %c0_4 = arith.constant 0 : index
    %c0_5 = arith.constant 0 : index
    %c0_6 = arith.constant 0 : index
    %4 = vector.load %arg4[%c0_4, %c0_5, %c0_6] : memref<2x1x128xf32, #tpu.memory_space<vmem>>, vector<1x1x128xf32>
    %5 = vector.shape_cast %4 : vector<1x1x128xf32> to vector<1x128xf32>
    %6 = vector.broadcast %5 : vector<1x128xf32> to vector<64x128xf32>
    %7 = arith.addf %3, %6 : vector<64x128xf32>
    %8 = arith.negf %7 : vector<64x128xf32>
    %9 = math.exp %8 : vector<64x128xf32>
    %cst_7 = arith.constant 1.000000e+00 : f32
    %10 = vector.broadcast %cst_7 : f32 to vector<64x128xf32>
    %11 = arith.addf %10, %9 : vector<64x128xf32>
    %12 = arith.divf %10, %11 : vector<64x128xf32>
    %13 = arith.mulf %7, %12 : vector<64x128xf32>
    %14 = arith.addf %0, %13 : vector<64x128xf32>
    %c1 = arith.constant 1 : index
    %c0_8 = arith.constant 0 : index
    %c0_9 = arith.constant 0 : index
    %15 = vector.load %arg3[%c1, %c0_8, %c0_9] : memref<2x128x128xf32, #tpu.memory_space<vmem>>, vector<1x128x128xf32>
    %16 = vector.shape_cast %15 : vector<1x128x128xf32> to vector<128x128xf32>
    %cst_10 = arith.constant dense<0.000000e+00> : vector<64x128xf32>
    %17 = tpu.matmul %14, %16, %cst_10 {dimension_numbers = #tpu.dot_dimension_numbers<[1], [0], [0], [1], [0, 0, 1, 1], [], []>} : vector<64x128xf32>, vector<128x128xf32>, vector<64x128xf32> -> vector<64x128xf32>
    %c1_11 = arith.constant 1 : index
    %c0_12 = arith.constant 0 : index
    %c0_13 = arith.constant 0 : index
    %18 = vector.load %arg4[%c1_11, %c0_12, %c0_13] : memref<2x1x128xf32, #tpu.memory_space<vmem>>, vector<1x1x128xf32>
    %19 = vector.shape_cast %18 : vector<1x1x128xf32> to vector<1x128xf32>
    %20 = vector.broadcast %19 : vector<1x128xf32> to vector<64x128xf32>
    %21 = arith.addf %17, %20 : vector<64x128xf32>
    %22 = arith.negf %21 : vector<64x128xf32>
    %23 = math.exp %22 : vector<64x128xf32>
    %cst_14 = arith.constant 1.000000e+00 : f32
    %24 = vector.broadcast %cst_14 : f32 to vector<64x128xf32>
    %25 = arith.addf %24, %23 : vector<64x128xf32>
    %26 = arith.divf %24, %25 : vector<64x128xf32>
    %27 = arith.mulf %21, %26 : vector<64x128xf32>
    %28 = arith.addf %14, %27 : vector<64x128xf32>
    %c0_15 = arith.constant 0 : index
    %c0_16 = arith.constant 0 : index
    %29 = vector.load %arg5[%c0_15, %c0_16] : memref<128x128xf32, #tpu.memory_space<vmem>>, vector<128x128xf32>
    %cst_17 = arith.constant dense<0.000000e+00> : vector<64x128xf32>
    %30 = tpu.matmul %28, %29, %cst_17 {dimension_numbers = #tpu.dot_dimension_numbers<[1], [0], [0], [1], [0, 0, 1, 1], [], []>} : vector<64x128xf32>, vector<128x128xf32>, vector<64x128xf32> -> vector<64x128xf32>
    %c0_18 = arith.constant 0 : index
    %c0_19 = arith.constant 0 : index
    %31 = vector.load %arg2[%c0_18, %c0_19] : memref<16x128xf32, #tpu.memory_space<vmem>>, vector<16x128xf32>
    %32 = vector.extract_strided_slice %30 {offsets = [0, 0], sizes = [16, 128], strides = [1, 1]} : vector<64x128xf32> to vector<16x128xf32>
    %33 = arith.addf %32, %31 : vector<16x128xf32>
    %c0_20 = arith.constant 0 : index
    %c0_21 = arith.constant 0 : index
    %34 = vector.load %arg6[%c0_20, %c0_21] : memref<64x128xf32, #tpu.memory_space<vmem>>, vector<16x128xf32>
    tpu.vector_store %arg6[%c0_20, %c0_21], %33 {strides = array<i32>} : memref<64x128xf32, #tpu.memory_space<vmem>>, vector<16x128xf32>,
    %35 = vector.extract_strided_slice %30 {offsets = [16, 0], sizes = [16, 128], strides = [1, 1]} : vector<64x128xf32> to vector<16x128xf32>
    %36 = arith.addf %35, %31 : vector<16x128xf32>
    %c16 = arith.constant 16 : index
    %c0_22 = arith.constant 0 : index
    %37 = vector.load %arg6[%c16, %c0_22] : memref<64x128xf32, #tpu.memory_space<vmem>>, vector<16x128xf32>
    tpu.vector_store %arg6[%c16, %c0_22], %36 {strides = array<i32>} : memref<64x128xf32, #tpu.memory_space<vmem>>, vector<16x128xf32>,
    %38 = vector.extract_strided_slice %30 {offsets = [32, 0], sizes = [16, 128], strides = [1, 1]} : vector<64x128xf32> to vector<16x128xf32>
    %39 = arith.addf %38, %31 : vector<16x128xf32>
    %c32 = arith.constant 32 : index
    %c0_23 = arith.constant 0 : index
    %40 = vector.load %arg6[%c32, %c0_23] : memref<64x128xf32, #tpu.memory_space<vmem>>, vector<16x128xf32>
    tpu.vector_store %arg6[%c32, %c0_23], %39 {strides = array<i32>} : memref<64x128xf32, #tpu.memory_space<vmem>>, vector<16x128xf32>,
    %41 = vector.extract_strided_slice %30 {offsets = [48, 0], sizes = [16, 128], strides = [1, 1]} : vector<64x128xf32> to vector<16x128xf32>
    %42 = arith.addf %41, %31 : vector<16x128xf32>
    %c48 = arith.constant 48 : index
    %c0_24 = arith.constant 0 : index
    %43 = vector.load %arg6[%c48, %c0_24] : memref<64x128xf32, #tpu.memory_space<vmem>>, vector<16x128xf32>
    tpu.vector_store %arg6[%c48, %c0_24], %42 {strides = array<i32>} : memref<64x128xf32, #tpu.memory_space<vmem>>, vector<16x128xf32>,
    return
  }
  func.func @transform_0(%arg0: i32) -> (i32, i32) {
    %c0_i32 = arith.constant 0 : i32
    %c0_i32_0 = arith.constant 0 : i32
    return %arg0, %c0_i32 : i32, i32
  }
  func.func @transform_1(%arg0: i32) -> (i32, i32) {
    %c0_i32 = arith.constant 0 : i32
    %c0_i32_0 = arith.constant 0 : i32
    %c0_i32_1 = arith.constant 0 : i32
    return %c0_i32, %c0_i32_0 : i32, i32
  }
  func.func @transform_2(%arg0: i32) -> (i32, i32, i32) {
    %c0_i32 = arith.constant 0 : i32
    %c0_i32_0 = arith.constant 0 : i32
    %c0_i32_1 = arith.constant 0 : i32
    %c0_i32_2 = arith.constant 0 : i32
    return %c0_i32, %c0_i32_0, %c0_i32_1 : i32, i32, i32
  }
  func.func @transform_3(%arg0: i32) -> (i32, i32, i32) {
    %c0_i32 = arith.constant 0 : i32
    %c0_i32_0 = arith.constant 0 : i32
    %c0_i32_1 = arith.constant 0 : i32
    %c0_i32_2 = arith.constant 0 : i32
    return %c0_i32, %c0_i32_0, %c0_i32_1 : i32, i32, i32
  }
  func.func @transform_4(%arg0: i32) -> (i32, i32) {
    %c0_i32 = arith.constant 0 : i32
    %c0_i32_0 = arith.constant 0 : i32
    %c0_i32_1 = arith.constant 0 : i32
    return %c0_i32, %c0_i32_0 : i32, i32
  }
  func.func @transform_5(%arg0: i32) -> (i32, i32) {
    %c0_i32 = arith.constant 0 : i32
    %c0_i32_0 = arith.constant 0 : i32
    return %arg0, %c0_i32 : i32, i32
  }
}

</mosaic_0001>

<bundles_post_ra>
// kernel: tpu_custom_call.1
= control target key start
LH: loop header
LB: loop body
LE: loop exit
PB: predicated region body
PF: predicated region fallthrough
CT: control target
= control target key end

     0   :  { %10 = vsyncpa [#allocation3], 0  ;;  %s1199_s0 = inlined_call_operand.hbm [shape: f32[64,128], index: 0, kind: input, shape index: {}]   ;;  %s1200_s1 = inlined_call_operand.hbm [shape: f32[16,128], index: 1, kind: input, shape index: {}]   ;;  %s1201_s2 = inlined_call_operand.hbm [shape: f32[2,128,128], index: 2, kind: input, shape index: {}]   ;;  %s1202_s3 = inlined_call_operand.vmem [shape: f32[2,1,128], index: 3, kind: input, shape index: {}]   ;;  %s1203_s4 = inlined_call_operand.hbm [shape: f32[128,128], index: 4, kind: input, shape index: {}]   ;;  %s1204_s5 = inlined_call_operand.hbm [shape: f32[64,128], index: 5, kind: output, shape index: {}]  }
   0x1   :  { %11 = vsyncpa [#allocation6], 0 }
   0x2   :  { %12 = vsyncpa [#allocation9], 0 }
   0x3   :  { %13 = vsyncpa [#allocation4], 0  ;;  %s1062_s18 = smov [#allocation5]   ;;  %s1063_s20 = smov [#allocation2]  }
   0x4   :  { %s31_s19 = sshll.u32 %s1062_s18, 4  ;;  %s19_s21 = sshll.u32 %s1063_s20, 4  ;;  %s32_s19 = int_to_ptr.vmem [resolvable:$true] %s31_s19  ;;  %s20_s21 = int_to_ptr.vmem [resolvable:$true] %s19_s21 }
   0x5   :  { %s962_s22 = scalar_lea.vmem %s32_s19, 256  ;;  %p967_p1 = scmp.lt.s32.totalorder %s32_s19, %s32_s19 }
   0x6   :  { %p963_p0 = scmp.ne.s32.totalorder %s32_s19, %s962_s22  ;;  %p968_p2 = scmp.lt.s32.totalorder %s962_s22, %s962_s22 }
   0x8   :  { %p969_p3 = por %p968_p2, %p967_p1 }
   0xa   :  { %p970_p4 = pnand %p969_p3, %p963_p0 }
   0xc   :  { %973 = shalt.err (!%p970_p4)
}
   0xd   :  { %s1064_s23 = smov 128   ;;  %s1065_s24 = smov 8  }
   0xe   :  { %37 = dma.hbm_to_vmem [thread:$0]  %s1200_s1, 256, %s32_s19, [#allocation6], %s1064_s23, %s1064_s23, %s1065_s24  }
   0xf   :  { %s982_s27 = scalar_lea.vmem %s20_s21, 1024  ;;  %p987_p6 = scmp.lt.s32.totalorder %s20_s21, %s20_s21 }
  0x10   :  { %p983_p5 = scmp.ne.s32.totalorder %s20_s21, %s982_s27  ;;  %p988_p7 = scmp.lt.s32.totalorder %s982_s27, %s982_s27 }
  0x12   :  { %p989_p8 = por %p988_p7, %p987_p6 }
  0x14   :  { %p990_p9 = pnand %p989_p8, %p983_p5 }
  0x16   :  { %993 = shalt.err (!%p990_p9)
}
  0x17   :  { %25 = dma.hbm_to_vmem [thread:$0]  %s1199_s0, 1024, %s20_s21, [#allocation3], %s1064_s23, %s1064_s23, %s1065_s24  }
  0x18   :  { %s1066_s30 = smov [#allocation7]   ;;  %s1067_s7 = smov [#allocation8]  }
  0x19   :  { %s43_s6 = sshll.u32 %s1066_s30, 4  ;;  %s57_s8 = sshll.u32 %s1067_s7, 4  ;;  %s44_s6 = int_to_ptr.vmem [resolvable:$true] %s43_s6  ;;  %s58_s8 = int_to_ptr.vmem [resolvable:$true] %s57_s8 }
  0x1a   :  { %s1002_s1 = scalar_lea.vmem %s44_s6, 4096  ;;  %p1007_p11 = scmp.lt.s32.totalorder %s44_s6, %s44_s6 }
  0x1b   :  { %p1003_p10 = scmp.ne.s32.totalorder %s44_s6, %s1002_s1  ;;  %p1008_p12 = scmp.lt.s32.totalorder %s1002_s1, %s1002_s1 }
  0x1d   :  { %p1009_p13 = por %p1008_p12, %p1007_p11 }
  0x1f   :  { %p1010_p0 = pnand %p1009_p13, %p1003_p10 }
  0x21   :  { %1013 = shalt.err (!%p1010_p0)
}
  0x22   :  { %49 = dma.hbm_to_vmem [thread:$0]  %s1201_s2, 4096, %s44_s6, [#allocation6], %s1064_s23, %s1064_s23, %s1065_s24  }
  0x23   :  { %s1022_s0 = scalar_lea.vmem %s58_s8, 2048  ;;  %p1027_p2 = scmp.lt.s32.totalorder %s58_s8, %s58_s8 }
  0x24   :  { %p1023_p1 = scmp.ne.s32.totalorder %s58_s8, %s1022_s0  ;;  %p1028_p3 = scmp.lt.s32.totalorder %s1022_s0, %s1022_s0 }
  0x26   :  { %p1029_p4 = por %p1028_p3, %p1027_p2 }
  0x28   :  { %p1030_p5 = pnand %p1029_p4, %p1023_p1 }
  0x2a   :  { %1033 = shalt.err (!%p1030_p5)
}
  0x2b   :  { %63 = dma.hbm_to_vmem [thread:$0]  %s1203_s4, 2048, %s58_s8, [#allocation9], %s1064_s23, %s1064_s23, %s1065_s24  }
  0x2c   :  { %1054 = dma.done.wait [#allocation3], 1024  }
  0x2d   :  { %1055 = vsyncadd [#allocation3], 4294966272 }
  0x2e   :  { %1056 = dma.done.wait [#allocation6], 4352  }
  0x2f   :  { %1057 = vsyncadd [#allocation6], 4294962944 }
  0x30   :  { %1058 = dma.done.wait [#allocation9], 2048  }
  0x31   :  { %1059 = vsyncadd [#allocation9], 4294965248  ;;  %v99_v0 = vld [vmem:[#allocation7 + $0x78] sm:$0xff]  ;;  %v98_v1 = vld [vmem:[#allocation7 + $0x70] sm:$0xff] }
  0x32   :  { %719 = vmatprep.subr.mxu0 %v99_v0  ;;  %v97_v2 = vld [vmem:[#allocation7 + $0x68] sm:$0xff]  ;;  %v96_v3 = vld [vmem:[#allocation7 + $0x60] sm:$0xff]  ;;  %v1123_v4 = vld [vmem:[#allocation2] sm:$0xff] }
  0x33   :  { %720 = vmatpush3.msra.mxu0 %v99_v0  ;;  %v95_v5 = vld [vmem:[#allocation7 + $0x58] sm:$0xff]  ;;  %751 = vmatprep.mubr.f32.mxu0 %v1123_v4  ;;  %v94_v6 = vld [vmem:[#allocation7 + $0x50] sm:$0xff]  ;;  %v93_v7 = vld [vmem:[#allocation7 + $0x48] sm:$0xff] }
  0x34   :  { %721 = vmatprep.subr.mxu0 %v98_v1  ;;  %v92_v8 = vld [vmem:[#allocation7 + $0x40] sm:$0xff]  ;;  %v91_v9 = vld [vmem:[#allocation7 + $0x38] sm:$0xff]  ;;  %v90_v10 = vld [vmem:[#allocation7 + $0x30] sm:$0xff] }
  0x35   :  { %722 = vmatpush3.msra.mxu0 %v98_v1  ;;  %v89_v11 = vld [vmem:[#allocation7 + $0x28] sm:$0xff]  ;;  %v88_v12 = vld [vmem:[#allocation7 + $0x20] sm:$0xff]  ;;  %v87_v13 = vld [vmem:[#allocation7 + $0x18] sm:$0xff] }
  0x36   :  { %723 = vmatprep.subr.mxu0 %v97_v2  ;;  %v86_v14 = vld [vmem:[#allocation7 + $0x10] sm:$0xff]  ;;  %v85_v15 = vld [vmem:[#allocation7 + $0x8] sm:$0xff]  ;;  %v84_v16 = vld [vmem:[#allocation7] sm:$0xff] }
  0x37   :  { %724 = vmatpush3.msra.mxu0 %v97_v2  ;;  %v1126_v17 = vld [vmem:[#allocation2 + $0x8] sm:$0xff]  ;;  %v1128_v18 = vld [vmem:[#allocation2 + $0x10] sm:$0xff]  ;;  %v1132_v19 = vld [vmem:[#allocation2 + $0x18] sm:$0xff] }
  0x38   :  { %725 = vmatprep.subr.mxu0 %v96_v3  ;;  %v1134_v20 = vld [vmem:[#allocation2 + $0x20] sm:$0xff]  ;;  %v1138_v21 = vld [vmem:[#allocation2 + $0x28] sm:$0xff]  ;;  %v1140_v22 = vld [vmem:[#allocation2 + $0x30] sm:$0xff] }
  0x39   :  { %726 = vmatpush3.msra.mxu0 %v96_v3  ;;  %v1144_v23 = vld [vmem:[#allocation2 + $0x38] sm:$0xff]  ;;  %v292_v24 = vld [vmem:[#allocation7 + $0xf8] sm:$0xff]  ;;  %v291_v25 = vld [vmem:[#allocation7 + $0xf0] sm:$0xff] }
  0x3a   :  { %727 = vmatprep.subr.mxu0 %v95_v5  ;;  %763 = vmatprep.subr.mxu1 %v292_v24  ;;  %v290_v26 = vld [vmem:[#allocation7 + $0xe8] sm:$0xff]  ;;  %v289_v27 = vld [vmem:[#allocation7 + $0xe0] sm:$0xff]  ;;  %v288_v28 = vld [vmem:[#allocation7 + $0xd8] sm:$0xff] }
  0x3b   :  { %728 = vmatpush3.msra.mxu0 %v95_v5  ;;  %764 = vmatpush3.msra.mxu1 %v292_v24  ;;  %v287_v29 = vld [vmem:[#allocation7 + $0xd0] sm:$0xff]  ;;  %v286_v30 = vld [vmem:[#allocation7 + $0xc8] sm:$0xff]  ;;  %v285_v31 = vld [vmem:[#allocation7 + $0xc0] sm:$0xff] }
  0x3c   :  { %729 = vmatprep.subr.mxu0 %v94_v6  ;;  %765 = vmatprep.subr.mxu1 %v291_v25  ;;  %v284_v32 = vld [vmem:[#allocation7 + $0xb8] sm:$0xff]  ;;  %v283_v33 = vld [vmem:[#allocation7 + $0xb0] sm:$0xff]  ;;  %v282_v34 = vld [vmem:[#allocation7 + $0xa8] sm:$0xff] }
  0x3d   :  { %730 = vmatpush3.msra.mxu0 %v94_v6  ;;  %766 = vmatpush3.msra.mxu1 %v291_v25  ;;  %v281_v35 = vld [vmem:[#allocation7 + $0xa0] sm:$0xff]  ;;  %v280_v36 = vld [vmem:[#allocation7 + $0x98] sm:$0xff]  ;;  %v279_v37 = vld [vmem:[#allocation7 + $0x90] sm:$0xff] }
  0x3e   :  { %731 = vmatprep.subr.mxu0 %v93_v7  ;;  %767 = vmatprep.subr.mxu1 %v290_v26  ;;  %v278_v38 = vld [vmem:[#allocation7 + $0x88] sm:$0xff]  ;;  %v277_v39 = vld [vmem:[#allocation7 + $0x80] sm:$0xff]  ;;  %v628_v40 = vld [vmem:[%s1202_s3] ss:$0 sm:$0xff] }
  0x3f   :  { %732 = vmatpush3.msra.mxu0 %v93_v7  ;;  %768 = vmatpush3.msra.mxu1 %v290_v26 }
  0x40   :  { %733 = vmatprep.subr.mxu0 %v92_v8  ;;  %769 = vmatprep.subr.mxu1 %v289_v27 }
  0x41   :  { %734 = vmatpush3.msra.mxu0 %v92_v8  ;;  %770 = vmatpush3.msra.mxu1 %v289_v27 }
  0x42   :  { %735 = vmatprep.subr.mxu0 %v91_v9  ;;  %771 = vmatprep.subr.mxu1 %v288_v28 }
  0x43   :  { %736 = vmatpush3.msra.mxu0 %v91_v9  ;;  %772 = vmatpush3.msra.mxu1 %v288_v28 }
  0x44   :  { %737 = vmatprep.subr.mxu0 %v90_v10  ;;  %773 = vmatprep.subr.mxu1 %v287_v29 }
  0x45   :  { %738 = vmatpush3.msra.mxu0 %v90_v10  ;;  %774 = vmatpush3.msra.mxu1 %v287_v29 }
  0x46   :  { %739 = vmatprep.subr.mxu0 %v89_v11  ;;  %775 = vmatprep.subr.mxu1 %v286_v30 }
  0x47   :  { %740 = vmatpush3.msra.mxu0 %v89_v11  ;;  %776 = vmatpush3.msra.mxu1 %v286_v30 }
  0x48   :  { %741 = vmatprep.subr.mxu0 %v88_v12  ;;  %777 = vmatprep.subr.mxu1 %v285_v31 }
  0x49   :  { %742 = vmatpush3.msra.mxu0 %v88_v12  ;;  %778 = vmatpush3.msra.mxu1 %v285_v31 }
  0x4a   :  { %743 = vmatprep.subr.mxu0 %v87_v13  ;;  %779 = vmatprep.subr.mxu1 %v284_v32 }
  0x4b   :  { %744 = vmatpush3.msra.mxu0 %v87_v13  ;;  %780 = vmatpush3.msra.mxu1 %v284_v32 }
  0x4c   :  { %745 = vmatprep.subr.mxu0 %v86_v14  ;;  %781 = vmatprep.subr.mxu1 %v283_v33 }
  0x4d   :  { %746 = vmatpush3.msra.mxu0 %v86_v14  ;;  %782 = vmatpush3.msra.mxu1 %v283_v33 }
  0x4e   :  { %747 = vmatprep.subr.mxu0 %v85_v15  ;;  %783 = vmatprep.subr.mxu1 %v282_v34 }
  0x4f   :  { %748 = vmatpush3.msra.mxu0 %v85_v15  ;;  %784 = vmatpush3.msra.mxu1 %v282_v34 }
  0x50   :  { %749 = vmatprep.subr.mxu0 %v84_v16  ;;  %785 = vmatprep.subr.mxu1 %v281_v35 }
  0x51   :  { %750 = vmatpush3.msra.mxu0 %v84_v16  ;;  %786 = vmatpush3.msra.mxu1 %v281_v35 }
  0x52   :  { %752 = vmatmul.mubr.f32.vlgmr.msra.gmra.mxu0 %v1126_v17  ;;  %787 = vmatprep.subr.mxu1 %v280_v36 }
  0x53   :  { %754 = vmatprep.mubr.f32.mxu0 %v1128_v18  ;;  %788 = vmatpush3.msra.mxu1 %v280_v36 }
  0x54   :  { %789 = vmatprep.subr.mxu1 %v279_v37 }
  0x55   :  { %790 = vmatpush3.msra.mxu1 %v279_v37 }
  0x56   :  { %755 = vmatmul.mubr.f32.gmra.mxu0 %v1132_v19  ;;  %791 = vmatprep.subr.mxu1 %v278_v38 }
  0x57   :  { %757 = vmatprep.mubr.f32.mxu0 %v1134_v20  ;;  %792 = vmatpush3.msra.mxu1 %v278_v38 }
  0x58   :  { %793 = vmatprep.subr.mxu1 %v277_v39 }
  0x59   :  { %794 = vmatpush3.msra.mxu1 %v277_v39 }
  0x5a   :  { %758 = vmatmul.mubr.f32.gmra.mxu0 %v1138_v21 }
  0x5b   :  { %760 = vmatprep.mubr.f32.mxu0 %v1140_v22 }
  0x5e   :  { %761 = vmatmul.mubr.f32.gmra.mxu0 %v1144_v23 }
 0x112   :  { %v753_v41 = vpop.f32.mrf.mxu0 }
 0x113   :  { %v179_v42 = vadd.f32 %v753_v41, %v628_v40 }
 0x114   :  { %v173_v43 = vpop.f32.mrf.mxu0 }
 0x115   :  { %v630_v44 = vmul.f32 -1.442695, %v179_v42  ;;  %v174_v45 = vadd.f32 %v628_v40, %v173_v43 }
 0x116   :  { %v756_v46 = vpop.f32.mrf.mxu0 }
 0x117   :  { %890 = vpow2.f32 %v630_v44  ;;  %v629_v47 = vmul.f32 -1.442695, %v174_v45  ;;  %v189_v48 = vadd.f32 %v756_v46, %v628_v40  ;;  %v480_v46 = vld [vmem:[#allocation8 + $0x50] sm:$0xff] }
 0x118   :  { %v183_v49 = vpop.f32.mrf.mxu0 }
 0x119   :  { %892 = vpow2.f32 %v629_v47  ;;  %v632_v50 = vmul.f32 -1.442695, %v189_v48  ;;  %v184_v51 = vadd.f32 %v628_v40, %v183_v49  ;;  %v479_v47 = vld [vmem:[#allocation8 + $0x48] sm:$0xff]  ;;  %v477_v49 = vld [vmem:[#allocation8 + $0x38] sm:$0xff] }
 0x11a   :  { %v759_v52 = vpop.f32.mrf.mxu0 }
 0x11b   :  { %894 = vpow2.f32 %v632_v50  ;;  %v631_v53 = vmul.f32 -1.442695, %v184_v51  ;;  %v199_v54 = vadd.f32 %v759_v52, %v628_v40  ;;  %v476_v50 = vld [vmem:[#allocation8 + $0x30] sm:$0xff]  ;;  %v474_v52 = vld [vmem:[#allocation8 + $0x20] sm:$0xff] }
 0x11c   :  { %v193_v55 = vpop.f32.mrf.mxu0 }
 0x11d   :  { %896 = vpow2.f32 %v631_v53  ;;  %v634_v56 = vmul.f32 -1.442695, %v199_v54  ;;  %v194_v57 = vadd.f32 %v628_v40, %v193_v55  ;;  %v473_v53 = vld [vmem:[#allocation8 + $0x18] sm:$0xff]  ;;  %v471_v55 = vld [vmem:[#allocation8 + $0x8] sm:$0xff] }
 0x11e   :  { %v762_v58 = vpop.f32.mrf.mxu0 }
 0x11f   :  { %898 = vpow2.f32 %v634_v56  ;;  %v633_v59 = vmul.f32 -1.442695, %v194_v57  ;;  %v209_v60 = vadd.f32 %v762_v58, %v628_v40  ;;  %v470_v56 = vld [vmem:[#allocation8] sm:$0xff] }
 0x120   :  { %v203_v61 = vpop.f32.mrf.mxu0 }
 0x121   :  { %900 = vpow2.f32 %v633_v59  ;;  %v636_v62 = vmul.f32 -1.442695, %v209_v60  ;;  %v204_v63 = vadd.f32 %v628_v40, %v203_v61 }
 0x123   :  { %902 = vpow2.f32 %v636_v62  ;;  %v635_v0 = vmul.f32 -1.442695, %v204_v63 }
 0x124   :  { %v891_v1 = vpop.eup %890 }
 0x125   :  { %v237_v2 = vadd.f32 1.0, %v891_v1  ;;  %904 = vpow2.f32 %v635_v0 }
 0x126   :  { %v893_v3 = vpop.eup %892 }
 0x127   :  { %906 = vrcp.f32 %v237_v2  ;;  %v236_v5 = vadd.f32 1.0, %v893_v3 }
 0x128   :  { %v895_v6 = vpop.eup %894 }
 0x129   :  { %908 = vrcp.f32 %v236_v5  ;;  %v239_v7 = vadd.f32 1.0, %v895_v6 }
 0x12a   :  { %v897_v8 = vpop.eup %896 }
 0x12b   :  { %910 = vrcp.f32 %v239_v7  ;;  %v238_v9 = vadd.f32 1.0, %v897_v8 }
 0x12c   :  { %v899_v10 = vpop.eup %898 }
 0x12d   :  { %912 = vrcp.f32 %v238_v9  ;;  %v241_v11 = vadd.f32 1.0, %v899_v10 }
 0x12e   :  { %v901_v12 = vpop.eup %900 }
 0x12f   :  { %914 = vrcp.f32 %v241_v11  ;;  %v240_v13 = vadd.f32 1.0, %v901_v12 }
 0x130   :  { %v903_v14 = vpop.eup %902 }
 0x131   :  { %916 = vrcp.f32 %v240_v13  ;;  %v243_v15 = vadd.f32 1.0, %v903_v14 }
 0x132   :  { %v905_v16 = vpop.eup %904 }
 0x133   :  { %918 = vrcp.f32 %v243_v15  ;;  %v242_v24 = vadd.f32 1.0, %v905_v16 }
 0x134   :  { %v907_v25 = vpop.eup %906 }
 0x135   :  { %920 = vrcp.f32 %v242_v24  ;;  %v261_v27 = vmul.f32 %v907_v25, %v179_v42 }
 0x136   :  { %v909_v26 = vpop.eup %908 }
 0x137   :  { %v260_v28 = vmul.f32 %v909_v26, %v174_v45  ;;  %v1154_v33 = vadd.f32 %v261_v27, %v1126_v17  ;;  %v483_v45 = vld [vmem:[#allocation8 + $0x68] sm:$0xff] }
 0x138   :  { %v911_v29 = vpop.eup %910 }
 0x139   :  { %v1151_v30 = vadd.f32 %v260_v28, %v1123_v4  ;;  %v263_v32 = vmul.f32 %v911_v29, %v189_v48  ;;  %v478_v48 = vld [vmem:[#allocation8 + $0x40] sm:$0xff] }
 0x13a   :  { %v913_v31 = vpop.eup %912 }
 0x13b   :  { %v262_v34 = vmul.f32 %v913_v31, %v184_v51  ;;  %795 = vmatprep.mubr.f32.mxu1 %v1151_v30  ;;  %v1162_v39 = vadd.f32 %v263_v32, %v1132_v19  ;;  %v475_v51 = vld [vmem:[#allocation8 + $0x28] sm:$0xff] }
 0x13c   :  { %v915_v35 = vpop.eup %914  ;;  %796 = vmatmul.mubr.f32.vlgmr.msra.gmra.mxu1 %v1154_v33 }
 0x13d   :  { %v1159_v36 = vadd.f32 %v262_v34, %v1128_v18  ;;  %v265_v38 = vmul.f32 %v915_v35, %v199_v54  ;;  %v472_v54 = vld [vmem:[#allocation8 + $0x10] sm:$0xff] }
 0x13e   :  { %v917_v37 = vpop.eup %916 }
 0x13f   :  { %v264_v4 = vmul.f32 %v917_v37, %v194_v57  ;;  %798 = vmatprep.mubr.f32.mxu1 %v1159_v36  ;;  %v1170_v43 = vadd.f32 %v265_v38, %v1138_v21  ;;  %v484_v21 = vld [vmem:[#allocation8 + $0x70] sm:$0xff] }
 0x140   :  { %v919_v40 = vpop.eup %918  ;;  %799 = vmatmul.mubr.f32.gmra.mxu1 %v1162_v39  ;;  %v638_v57 = vld [vmem:[%s1202_s3 + $0x1] ss:$0 sm:$0xff]  ;;  %s1068_s3 = smov [#allocation10]  }
 0x141   :  { %v1167_v17 = vadd.f32 %v264_v4, %v1134_v20  ;;  %v267_v42 = vmul.f32 %v919_v40, %v209_v60  ;;  %v485_v20 = vld [vmem:[#allocation8 + $0x78] sm:$0xff]  ;;  %s614_s15 = sshll.u32 %s1068_s3, 4  ;;  %s615_s15 = int_to_ptr.vmem [resolvable:$true] %s614_s15 }
 0x142   :  { %v921_v41 = vpop.eup %920  ;;  %807 = vmatprep.subr.mxu0 %v485_v20  ;;  %851 = vmatprep.subr.mxu1 %v485_v20  ;;  %s1034_s16 = scalar_lea.vmem %s615_s15, 1024  ;;  %p1039_p7 = scmp.lt.s32.totalorder %s615_s15, %s615_s15 }
 0x143   :  { %v266_v18 = vmul.f32 %v921_v41, %v204_v63  ;;  %801 = vmatprep.mubr.f32.mxu1 %v1167_v17  ;;  %v1178_v44 = vadd.f32 %v267_v42, %v1144_v23  ;;  %808 = vmatpush3.msra.mxu0 %v485_v20  ;;  %v481_v23 = vld [vmem:[#allocation8 + $0x58] sm:$0xff]  ;;  %p1035_p6 = scmp.ne.s32.totalorder %s615_s15, %s1034_s16  ;;  %p1040_p8 = scmp.lt.s32.totalorder %s1034_s16, %s1034_s16 }
 0x144   :  { %802 = vmatmul.mubr.f32.gmra.mxu1 %v1170_v43  ;;  %809 = vmatprep.subr.mxu0 %v484_v21 }
 0x145   :  { %v1175_v19 = vadd.f32 %v266_v18, %v1140_v22  ;;  %867 = vmatpush3.msra.mxu1 %v485_v20  ;;  %810 = vmatpush3.msra.mxu0 %v484_v21  ;;  %v482_v22 = vld [vmem:[#allocation8 + $0x60] sm:$0xff]  ;;  %p1041_p9 = por %p1040_p8, %p1039_p7 }
 0x146   :  { %852 = vmatprep.subr.mxu1 %v484_v21  ;;  %811 = vmatprep.subr.mxu0 %v483_v45 }
 0x147   :  { %804 = vmatprep.mubr.f32.mxu1 %v1175_v19  ;;  %868 = vmatpush3.msra.mxu1 %v484_v21  ;;  %p1042_p10 = pnand %p1041_p9, %p1035_p6 }
 0x148   :  { %805 = vmatmul.mubr.f32.gmra.mxu1 %v1178_v44  ;;  %853 = vmatprep.subr.mxu1 %v483_v45 }
 0x149   :  { %812 = vmatpush3.msra.mxu0 %v483_v45  ;;  %869 = vmatpush3.msra.mxu1 %v483_v45 }
 0x14a   :  { %813 = vmatprep.subr.mxu0 %v482_v22  ;;  %854 = vmatprep.subr.mxu1 %v482_v22 }
 0x14b   :  { %814 = vmatpush3.msra.mxu0 %v482_v22  ;;  %870 = vmatpush3.msra.mxu1 %v482_v22 }
 0x14c   :  { %815 = vmatprep.subr.mxu0 %v481_v23  ;;  %855 = vmatprep.subr.mxu1 %v481_v23 }
 0x14d   :  { %816 = vmatpush3.msra.mxu0 %v481_v23  ;;  %871 = vmatpush3.msra.mxu1 %v481_v23 }
 0x14e   :  { %817 = vmatprep.subr.mxu0 %v480_v46  ;;  %856 = vmatprep.subr.mxu1 %v480_v46 }
 0x14f   :  { %818 = vmatpush3.msra.mxu0 %v480_v46  ;;  %872 = vmatpush3.msra.mxu1 %v480_v46 }
 0x150   :  { %819 = vmatprep.subr.mxu0 %v479_v47  ;;  %857 = vmatprep.subr.mxu1 %v479_v47 }
 0x151   :  { %820 = vmatpush3.msra.mxu0 %v479_v47  ;;  %873 = vmatpush3.msra.mxu1 %v479_v47 }
 0x152   :  { %821 = vmatprep.subr.mxu0 %v478_v48  ;;  %858 = vmatprep.subr.mxu1 %v478_v48 }
 0x153   :  { %822 = vmatpush3.msra.mxu0 %v478_v48  ;;  %874 = vmatpush3.msra.mxu1 %v478_v48 }
 0x154   :  { %823 = vmatprep.subr.mxu0 %v477_v49  ;;  %859 = vmatprep.subr.mxu1 %v477_v49 }
 0x155   :  { %824 = vmatpush3.msra.mxu0 %v477_v49  ;;  %875 = vmatpush3.msra.mxu1 %v477_v49 }
 0x156   :  { %825 = vmatprep.subr.mxu0 %v476_v50  ;;  %860 = vmatprep.subr.mxu1 %v476_v50 }
 0x157   :  { %826 = vmatpush3.msra.mxu0 %v476_v50  ;;  %876 = vmatpush3.msra.mxu1 %v476_v50 }
 0x158   :  { %827 = vmatprep.subr.mxu0 %v475_v51  ;;  %861 = vmatprep.subr.mxu1 %v475_v51 }
 0x159   :  { %828 = vmatpush3.msra.mxu0 %v475_v51  ;;  %877 = vmatpush3.msra.mxu1 %v475_v51 }
 0x15a   :  { %829 = vmatprep.subr.mxu0 %v474_v52  ;;  %862 = vmatprep.subr.mxu1 %v474_v52 }
 0x15b   :  { %830 = vmatpush3.msra.mxu0 %v474_v52  ;;  %878 = vmatpush3.msra.mxu1 %v474_v52 }
 0x15c   :  { %831 = vmatprep.subr.mxu0 %v473_v53  ;;  %863 = vmatprep.subr.mxu1 %v473_v53 }
 0x15d   :  { %832 = vmatpush3.msra.mxu0 %v473_v53  ;;  %879 = vmatpush3.msra.mxu1 %v473_v53 }
 0x15e   :  { %833 = vmatprep.subr.mxu0 %v472_v54  ;;  %864 = vmatprep.subr.mxu1 %v472_v54 }
 0x15f   :  { %834 = vmatpush3.msra.mxu0 %v472_v54  ;;  %880 = vmatpush3.msra.mxu1 %v472_v54 }
 0x160   :  { %835 = vmatprep.subr.mxu0 %v471_v55  ;;  %865 = vmatprep.subr.mxu1 %v471_v55 }
 0x161   :  { %836 = vmatpush3.msra.mxu0 %v471_v55  ;;  %881 = vmatpush3.msra.mxu1 %v471_v55 }
 0x162   :  { %837 = vmatprep.subr.mxu0 %v470_v56  ;;  %866 = vmatprep.subr.mxu1 %v470_v56 }
 0x163   :  { %838 = vmatpush3.msra.mxu0 %v470_v56  ;;  %882 = vmatpush3.msra.mxu1 %v470_v56 }
 0x1fc   :  { %v797_v58 = vpop.f32.mrf.mxu1 }
 0x1fd   :  { %v373_v59 = vadd.f32 %v797_v58, %v638_v57 }
 0x1fe   :  { %v367_v60 = vpop.f32.mrf.mxu1 }
 0x1ff   :  { %v640_v61 = vmul.f32 -1.442695, %v373_v59  ;;  %v368_v62 = vadd.f32 %v638_v57, %v367_v60 }
 0x200   :  { %v800_v63 = vpop.f32.mrf.mxu1 }
 0x201   :  { %922 = vpow2.f32 %v640_v61  ;;  %v639_v0 = vmul.f32 -1.442695, %v368_v62  ;;  %v383_v1 = vadd.f32 %v800_v63, %v638_v57 }
 0x202   :  { %v377_v2 = vpop.f32.mrf.mxu1 }
 0x203   :  { %924 = vpow2.f32 %v639_v0  ;;  %v642_v3 = vmul.f32 -1.442695, %v383_v1  ;;  %v378_v5 = vadd.f32 %v638_v57, %v377_v2  ;;  %v591_v0 = vld [vmem:[#allocation5] sm:$0xff] }
 0x204   :  { %v803_v6 = vpop.f32.mrf.mxu1 }
 0x205   :  { %926 = vpow2.f32 %v642_v3  ;;  %v641_v7 = vmul.f32 -1.442695, %v378_v5  ;;  %v393_v8 = vadd.f32 %v803_v6, %v638_v57 }
 0x206   :  { %v387_v9 = vpop.f32.mrf.mxu1 }
 0x207   :  { %928 = vpow2.f32 %v641_v7  ;;  %v644_v10 = vmul.f32 -1.442695, %v393_v8  ;;  %v388_v11 = vadd.f32 %v638_v57, %v387_v9 }
 0x208   :  { %v806_v12 = vpop.f32.mrf.mxu1 }
 0x209   :  { %930 = vpow2.f32 %v644_v10  ;;  %v643_v13 = vmul.f32 -1.442695, %v388_v11  ;;  %v403_v14 = vadd.f32 %v806_v12, %v638_v57 }
 0x20a   :  { %v397_v15 = vpop.f32.mrf.mxu1 }
 0x20b   :  { %932 = vpow2.f32 %v643_v13  ;;  %v646_v16 = vmul.f32 -1.442695, %v403_v14  ;;  %v398_v24 = vadd.f32 %v638_v57, %v397_v15 }
 0x20d   :  { %934 = vpow2.f32 %v646_v16  ;;  %v645_v25 = vmul.f32 -1.442695, %v398_v24 }
 0x20e   :  { %v923_v26 = vpop.eup %922 }
 0x20f   :  { %v431_v27 = vadd.f32 1.0, %v923_v26  ;;  %936 = vpow2.f32 %v645_v25 }
 0x210   :  { %v925_v28 = vpop.eup %924 }
 0x211   :  { %938 = vrcp.f32 %v431_v27  ;;  %v430_v29 = vadd.f32 1.0, %v925_v28 }
 0x212   :  { %v927_v31 = vpop.eup %926 }
 0x213   :  { %940 = vrcp.f32 %v430_v29  ;;  %v433_v32 = vadd.f32 1.0, %v927_v31 }
 0x214   :  { %v929_v34 = vpop.eup %928 }
 0x215   :  { %942 = vrcp.f32 %v433_v32  ;;  %v432_v35 = vadd.f32 1.0, %v929_v34 }
 0x216   :  { %v931_v37 = vpop.eup %930 }
 0x217   :  { %944 = vrcp.f32 %v432_v35  ;;  %v435_v38 = vadd.f32 1.0, %v931_v37 }
 0x218   :  { %v933_v4 = vpop.eup %932 }
 0x219   :  { %946 = vrcp.f32 %v435_v38  ;;  %v434_v40 = vadd.f32 1.0, %v933_v4 }
 0x21a   :  { %v935_v41 = vpop.eup %934 }
 0x21b   :  { %948 = vrcp.f32 %v434_v40  ;;  %v437_v42 = vadd.f32 1.0, %v935_v41 }
 0x21c   :  { %v937_v18 = vpop.eup %936 }
 0x21d   :  { %950 = vrcp.f32 %v437_v42  ;;  %v436_v20 = vadd.f32 1.0, %v937_v18 }
 0x21e   :  { %v939_v21 = vpop.eup %938 }
 0x21f   :  { %952 = vrcp.f32 %v436_v20  ;;  %v455_v22 = vmul.f32 %v939_v21, %v373_v59 }
 0x220   :  { %v941_v45 = vpop.eup %940 }
 0x221   :  { %v454_v23 = vmul.f32 %v941_v45, %v368_v62  ;;  %v463_v49 = vadd.f32 %v455_v22, %v1154_v33 }
 0x222   :  { %v943_v46 = vpop.eup %942 }
 0x223   :  { %v462_v47 = vadd.f32 %v454_v23, %v1151_v30  ;;  %v457_v50 = vmul.f32 %v943_v46, %v383_v1 }
 0x224   :  { %v945_v48 = vpop.eup %944 }
 0x225   :  { %v456_v51 = vmul.f32 %v945_v48, %v378_v5  ;;  %839 = vmatprep.mubr.f32.mxu0 %v462_v47  ;;  %v465_v56 = vadd.f32 %v457_v50, %v1162_v39  ;;  %v592_v39 = vld [vmem:[#allocation5 + $0x8] sm:$0xff] }
 0x226   :  { %v947_v52 = vpop.eup %946  ;;  %840 = vmatmul.mubr.f32.vlgmr.msra.gmra.mxu0 %v463_v49 }
 0x227   :  { %v464_v53 = vadd.f32 %v456_v51, %v1159_v36  ;;  %v459_v55 = vmul.f32 %v947_v52, %v393_v8 }
 0x228   :  { %v949_v54 = vpop.eup %948 }
 0x229   :  { %v458_v57 = vmul.f32 %v949_v54, %v388_v11  ;;  %842 = vmatprep.mubr.f32.mxu0 %v464_v53  ;;  %v467_v33 = vadd.f32 %v459_v55, %v1170_v43 }
 0x22a   :  { %v951_v58 = vpop.eup %950  ;;  %843 = vmatmul.mubr.f32.gmra.mxu0 %v465_v56 }
 0x22b   :  { %v466_v30 = vadd.f32 %v458_v57, %v1167_v17  ;;  %v461_v60 = vmul.f32 %v951_v58, %v403_v14 }
 0x22c   :  { %v953_v59 = vpop.eup %952 }
 0x22d   :  { %v460_v61 = vmul.f32 %v953_v59, %v398_v24  ;;  %845 = vmatprep.mubr.f32.mxu1 %v466_v30  ;;  %v469_v36 = vadd.f32 %v461_v60, %v1178_v44 }
 0x22e   :  { %846 = vmatmul.mubr.f32.vlgmr.msra.gmra.mxu1 %v467_v33 }
 0x22f   :  { %v468_v62 = vadd.f32 %v460_v61, %v1175_v19 }
 0x231   :  { %848 = vmatprep.mubr.f32.mxu1 %v468_v62 }
 0x232   :  { %849 = vmatmul.mubr.f32.gmra.mxu1 %v469_v36 }
 0x2e6   :  { %v841_v63 = vpop.f32.mrf.mxu0 }
 0x2e7   :  { %v594_v1 = vadd.f32 %v841_v63, %v592_v39 }
 0x2e8   :  { %v552_v2 = vpop.f32.mrf.mxu0 }
 0x2e9   :  { %596 = vst [vmem:[#allocation10 + $0x8] sm:$0xff] %v594_v1  ;;  %v593_v17 = vadd.f32 %v591_v0, %v552_v2 }
 0x2ea   :  { %v844_v3 = vpop.f32.mrf.mxu0 }
 0x2eb   :  { %595 = vst [vmem:[#allocation10] sm:$0xff] %v593_v17  ;;  %v598_v43 = vadd.f32 %v844_v3, %v592_v39 }
 0x2ec   :  { %v562_v5 = vpop.f32.mrf.mxu0 }
 0x2ed   :  { %600 = vst [vmem:[#allocation10 + $0x18] sm:$0xff] %v598_v43  ;;  %v597_v6 = vadd.f32 %v591_v0, %v562_v5 }
 0x2ee   :  { %v847_v7 = vpop.f32.mrf.mxu1 }
 0x2ef   :  { %599 = vst [vmem:[#allocation10 + $0x10] sm:$0xff] %v597_v6  ;;  %v602_v19 = vadd.f32 %v847_v7, %v592_v39 }
 0x2f0   :  { %v572_v8 = vpop.f32.mrf.mxu1 }
 0x2f1   :  { %604 = vst [vmem:[#allocation10 + $0x28] sm:$0xff] %v602_v19  ;;  %v601_v44 = vadd.f32 %v591_v0, %v572_v8 }
 0x2f2   :  { %v850_v9 = vpop.f32.mrf.mxu1 }
 0x2f3   :  { %603 = vst [vmem:[#allocation10 + $0x20] sm:$0xff] %v601_v44  ;;  %v606_v10 = vadd.f32 %v850_v9, %v592_v39 }
 0x2f4   :  { %v582_v11 = vpop.f32.mrf.mxu1 }
 0x2f5   :  { %608 = vst [vmem:[#allocation10 + $0x38] sm:$0xff] %v606_v10  ;;  %v605_v12 = vadd.f32 %v591_v0, %v582_v11 }
 0x2f7   :  { %607 = vst [vmem:[#allocation10 + $0x30] sm:$0xff] %v605_v12 }
 0x2f8   :  { %1045 = shalt.err (!%p1042_p10)
}
 0x2f9   :  { %620 = dma.vmem_to_hbm [thread:$0]  %s615_s15, 1024, %s1204_s5, [#allocation4], %s1064_s23, %s1064_s23, %s1065_s24  }
 0x2fa   :  { %1060 = dma.done.wait [#allocation4], 1024  }
 0x2fb   :  { %1061 = vsyncadd [#allocation4], 4294966272 }
 0x2fc   :  { %624 = vsyncpa [#allocation3], 1 }
 0x2fd   :  { %625 = vsyncpa [#allocation6], 1 }
 0x2fe   :  { %626 = vsyncpa [#allocation9], 1 }
 0x2ff   :  { %627 = vsyncpa [#allocation4], 1 }

// kernel: tpu_custom_call.1
= control target key start
LH: loop header
LB: loop body
LE: loop exit
PB: predicated region body
PF: predicated region fallthrough
CT: control target
= control target key end

     0   :  { %10 = vsyncpa [#allocation3], 0  ;;  %s1199_s0 = inlined_call_operand.hbm [shape: f32[64,128], index: 0, kind: input, shape index: {}]   ;;  %s1200_s1 = inlined_call_operand.hbm [shape: f32[16,128], index: 1, kind: input, shape index: {}]   ;;  %s1201_s2 = inlined_call_operand.hbm [shape: f32[2,128,128], index: 2, kind: input, shape index: {}]   ;;  %s1202_s3 = inlined_call_operand.vmem [shape: f32[2,1,128], index: 3, kind: input, shape index: {}]   ;;  %s1203_s4 = inlined_call_operand.hbm [shape: f32[128,128], index: 4, kind: input, shape index: {}]   ;;  %s1204_s5 = inlined_call_operand.hbm [shape: f32[64,128], index: 5, kind: output, shape index: {}]  }
   0x1   :  { %11 = vsyncpa [#allocation6], 0 }
   0x2   :  { %12 = vsyncpa [#allocation9], 0 }
   0x3   :  { %13 = vsyncpa [#allocation4], 0  ;;  %s1062_s18 = smov [#allocation5]   ;;  %s1063_s20 = smov [#allocation2]  }
   0x4   :  { %s31_s19 = sshll.u32 %s1062_s18, 4  ;;  %s19_s21 = sshll.u32 %s1063_s20, 4  ;;  %s32_s19 = int_to_ptr.vmem [resolvable:$true] %s31_s19  ;;  %s20_s21 = int_to_ptr.vmem [resolvable:$true] %s19_s21 }
   0x5   :  { %s962_s22 = scalar_lea.vmem %s32_s19, 256  ;;  %p967_p1 = scmp.lt.s32.totalorder %s32_s19, %s32_s19 }
   0x6   :  { %p963_p0 = scmp.ne.s32.totalorder %s32_s19, %s962_s22  ;;  %p968_p2 = scmp.lt.s32.totalorder %s962_s22, %s962_s22 }
   0x8   :  { %p969_p3 = por %p968_p2, %p967_p1 }
   0xa   :  { %p970_p4 = pnand %p969_p3, %p963_p0 }
   0xc   :  { %973 = shalt.err (!%p970_p4)
}
   0xd   :  { %s1064_s23 = smov 128   ;;  %s1065_s24 = smov 8  }
   0xe   :  { %37 = dma.hbm_to_vmem [thread:$0]  %s1200_s1, 256, %s32_s19, [#allocation6], %s1064_s23, %s1064_s23, %s1065_s24  }
   0xf   :  { %s982_s27 = scalar_lea.vmem %s20_s21, 1024  ;;  %p987_p6 = scmp.lt.s32.totalorder %s20_s21, %s20_s21 }
  0x10   :  { %p983_p5 = scmp.ne.s32.totalorder %s20_s21, %s982_s27  ;;  %p988_p7 = scmp.lt.s32.totalorder %s982_s27, %s982_s27 }
  0x12   :  { %p989_p8 = por %p988_p7, %p987_p6 }
  0x14   :  { %p990_p9 = pnand %p989_p8, %p983_p5 }
  0x16   :  { %993 = shalt.err (!%p990_p9)
}
  0x17   :  { %25 = dma.hbm_to_vmem [thread:$0]  %s1199_s0, 1024, %s20_s21, [#allocation3], %s1064_s23, %s1064_s23, %s1065_s24  }
  0x18   :  { %s1066_s30 = smov [#allocation7]   ;;  %s1067_s7 = smov [#allocation8]  }
  0x19   :  { %s43_s6 = sshll.u32 %s1066_s30, 4  ;;  %s57_s8 = sshll.u32 %s1067_s7, 4  ;;  %s44_s6 = int_to_ptr.vmem [resolvable:$true] %s43_s6  ;;  %s58_s8 = int_to_ptr.vmem [resolvable:$true] %s57_s8 }
  0x1a   :  { %s1002_s1 = scalar_lea.vmem %s44_s6, 4096  ;;  %p1007_p11 = scmp.lt.s32.totalorder %s44_s6, %s44_s6 }
  0x1b   :  { %p1003_p10 = scmp.ne.s32.totalorder %s44_s6, %s1002_s1  ;;  %p1008_p12 = scmp.lt.s32.totalorder %s1002_s1, %s1002_s1 }
  0x1d   :  { %p1009_p13 = por %p1008_p12, %p1007_p11 }
  0x1f   :  { %p1010_p0 = pnand %p1009_p13, %p1003_p10 }
  0x21   :  { %1013 = shalt.err (!%p1010_p0)
}
  0x22   :  { %49 = dma.hbm_to_vmem [thread:$0]  %s1201_s2, 4096, %s44_s6, [#allocation6], %s1064_s23, %s1064_s23, %s1065_s24  }
  0x23   :  { %s1022_s0 = scalar_lea.vmem %s58_s8, 2048  ;;  %p1027_p2 = scmp.lt.s32.totalorder %s58_s8, %s58_s8 }
  0x24   :  { %p1023_p1 = scmp.ne.s32.totalorder %s58_s8, %s1022_s0  ;;  %p1028_p3 = scmp.lt.s32.totalorder %s1022_s0, %s1022_s0 }
  0x26   :  { %p1029_p4 = por %p1028_p3, %p1027_p2 }
  0x28   :  { %p1030_p5 = pnand %p1029_p4, %p1023_p1 }
  0x2a   :  { %1033 = shalt.err (!%p1030_p5)
}
  0x2b   :  { %63 = dma.hbm_to_vmem [thread:$0]  %s1203_s4, 2048, %s58_s8, [#allocation9], %s1064_s23, %s1064_s23, %s1065_s24  }
  0x2c   :  { %1054 = dma.done.wait [#allocation3], 1024  }
  0x2d   :  { %1055 = vsyncadd [#allocation3], 4294966272 }
  0x2e   :  { %1056 = dma.done.wait [#allocation6], 4352  }
  0x2f   :  { %1057 = vsyncadd [#allocation6], 4294962944 }
  0x30   :  { %1058 = dma.done.wait [#allocation9], 2048  }
  0x31   :  { %1059 = vsyncadd [#allocation9], 4294965248  ;;  %v99_v0 = vld [vmem:[#allocation7 + $0x78] sm:$0xff]  ;;  %v98_v1 = vld [vmem:[#allocation7 + $0x70] sm:$0xff] }
  0x32   :  { %719 = vmatprep.subr.mxu0 %v99_v0  ;;  %v97_v2 = vld [vmem:[#allocation7 + $0x68] sm:$0xff]  ;;  %v96_v3 = vld [vmem:[#allocation7 + $0x60] sm:$0xff]  ;;  %v1123_v4 = vld [vmem:[#allocation2] sm:$0xff] }
  0x33   :  { %720 = vmatpush3.msra.mxu0 %v99_v0  ;;  %v95_v5 = vld [vmem:[#allocation7 + $0x58] sm:$0xff]  ;;  %751 = vmatprep.mubr.f32.mxu0 %v1123_v4  ;;  %v94_v6 = vld [vmem:[#allocation7 + $0x50] sm:$0xff]  ;;  %v93_v7 = vld [vmem:[#allocation7 + $0x48] sm:$0xff] }
  0x34   :  { %721 = vmatprep.subr.mxu0 %v98_v1  ;;  %v92_v8 = vld [vmem:[#allocation7 + $0x40] sm:$0xff]  ;;  %v91_v9 = vld [vmem:[#allocation7 + $0x38] sm:$0xff]  ;;  %v90_v10 = vld [vmem:[#allocation7 + $0x30] sm:$0xff] }
  0x35   :  { %722 = vmatpush3.msra.mxu0 %v98_v1  ;;  %v89_v11 = vld [vmem:[#allocation7 + $0x28] sm:$0xff]  ;;  %v88_v12 = vld [vmem:[#allocation7 + $0x20] sm:$0xff]  ;;  %v87_v13 = vld [vmem:[#allocation7 + $0x18] sm:$0xff] }
  0x36   :  { %723 = vmatprep.subr.mxu0 %v97_v2  ;;  %v86_v14 = vld [vmem:[#allocation7 + $0x10] sm:$0xff]  ;;  %v85_v15 = vld [vmem:[#allocation7 + $0x8] sm:$0xff]  ;;  %v84_v16 = vld [vmem:[#allocation7] sm:$0xff] }
  0x37   :  { %724 = vmatpush3.msra.mxu0 %v97_v2  ;;  %v1126_v17 = vld [vmem:[#allocation2 + $0x8] sm:$0xff]  ;;  %v1128_v18 = vld [vmem:[#allocation2 + $0x10] sm:$0xff]  ;;  %v1132_v19 = vld [vmem:[#allocation2 + $0x18] sm:$0xff] }
  0x38   :  { %725 = vmatprep.subr.mxu0 %v96_v3  ;;  %v1134_v20 = vld [vmem:[#allocation2 + $0x20] sm:$0xff]  ;;  %v1138_v21 = vld [vmem:[#allocation2 + $0x28] sm:$0xff]  ;;  %v1140_v22 = vld [vmem:[#allocation2 + $0x30] sm:$0xff] }
  0x39   :  { %726 = vmatpush3.msra.mxu0 %v96_v3  ;;  %v1144_v23 = vld [vmem:[#allocation2 + $0x38] sm:$0xff]  ;;  %v292_v24 = vld [vmem:[#allocation7 + $0xf8] sm:$0xff]  ;;  %v291_v25 = vld [vmem:[#allocation7 + $0xf0] sm:$0xff] }
  0x3a   :  { %727 = vmatprep.subr.mxu0 %v95_v5  ;;  %763 = vmatprep.subr.mxu1 %v292_v24  ;;  %v290_v26 = vld [vmem:[#allocation7 + $0xe8] sm:$0xff]  ;;  %v289_v27 = vld [vmem:[#allocation7 + $0xe0] sm:$0xff]  ;;  %v288_v28 = vld [vmem:[#allocation7 + $0xd8] sm:$0xff] }
  0x3b   :  { %728 = vmatpush3.msra.mxu0 %v95_v5  ;;  %764 = vmatpush3.msra.mxu1 %v292_v24  ;;  %v287_v29 = vld [vmem:[#allocation7 + $0xd0] sm:$0xff]  ;;  %v286_v30 = vld [vmem:[#allocation7 + $0xc8] sm:$0xff]  ;;  %v285_v31 = vld [vmem:[#allocation7 + $0xc0] sm:$0xff] }
  0x3c   :  { %729 = vmatprep.subr.mxu0 %v94_v6  ;;  %765 = vmatprep.subr.mxu1 %v291_v25  ;;  %v284_v32 = vld [vmem:[#allocation7 + $0xb8] sm:$0xff]  ;;  %v283_v33 = vld [vmem:[#allocation7 + $0xb0] sm:$0xff]  ;;  %v282_v34 = vld [vmem:[#allocation7 + $0xa8] sm:$0xff] }
  0x3d   :  { %730 = vmatpush3.msra.mxu0 %v94_v6  ;;  %766 = vmatpush3.msra.mxu1 %v291_v25  ;;  %v281_v35 = vld [vmem:[#allocation7 + $0xa0] sm:$0xff]  ;;  %v280_v36 = vld [vmem:[#allocation7 + $0x98] sm:$0xff]  ;;  %v279_v37 = vld [vmem:[#allocation7 + $0x90] sm:$0xff] }
  0x3e   :  { %731 = vmatprep.subr.mxu0 %v93_v7  ;;  %767 = vmatprep.subr.mxu1 %v290_v26  ;;  %v278_v38 = vld [vmem:[#allocation7 + $0x88] sm:$0xff]  ;;  %v277_v39 = vld [vmem:[#allocation7 + $0x80] sm:$0xff]  ;;  %v628_v40 = vld [vmem:[%s1202_s3] ss:$0 sm:$0xff] }
  0x3f   :  { %732 = vmatpush3.msra.mxu0 %v93_v7  ;;  %768 = vmatpush3.msra.mxu1 %v290_v26 }
  0x40   :  { %733 = vmatprep.subr.mxu0 %v92_v8  ;;  %769 = vmatprep.subr.mxu1 %v289_v27 }
  0x41   :  { %734 = vmatpush3.msra.mxu0 %v92_v8  ;;  %770 = vmatpush3.msra.mxu1 %v289_v27 }
  0x42   :  { %735 = vmatprep.subr.mxu0 %v91_v9  ;;  %771 = vmatprep.subr.mxu1 %v288_v28 }
  0x43   :  { %736 = vmatpush3.msra.mxu0 %v91_v9  ;;  %772 = vmatpush3.msra.mxu1 %v288_v28 }
  0x44   :  { %737 = vmatprep.subr.mxu0 %v90_v10  ;;  %773 = vmatprep.subr.mxu1 %v287_v29 }
  0x45   :  { %738 = vmatpush3.msra.mxu0 %v90_v10  ;;  %774 = vmatpush3.msra.mxu1 %v287_v29 }
  0x46   :  { %739 = vmatprep.subr.mxu0 %v89_v11  ;;  %775 = vmatprep.subr.mxu1 %v286_v30 }
  0x47   :  { %740 = vmatpush3.msra.mxu0 %v89_v11  ;;  %776 = vmatpush3.msra.mxu1 %v286_v30 }
  0x48   :  { %741 = vmatprep.subr.mxu0 %v88_v12  ;;  %777 = vmatprep.subr.mxu1 %v285_v31 }
  0x49   :  { %742 = vmatpush3.msra.mxu0 %v88_v12  ;;  %778 = vmatpush3.msra.mxu1 %v285_v31 }
  0x4a   :  { %743 = vmatprep.subr.mxu0 %v87_v13  ;;  %779 = vmatprep.subr.mxu1 %v284_v32 }
  0x4b   :  { %744 = vmatpush3.msra.mxu0 %v87_v13  ;;  %780 = vmatpush3.msra.mxu1 %v284_v32 }
  0x4c   :  { %745 = vmatprep.subr.mxu0 %v86_v14  ;;  %781 = vmatprep.subr.mxu1 %v283_v33 }
  0x4d   :  { %746 = vmatpush3.msra.mxu0 %v86_v14  ;;  %782 = vmatpush3.msra.mxu1 %v283_v33 }
  0x4e   :  { %747 = vmatprep.subr.mxu0 %v85_v15  ;;  %783 = vmatprep.subr.mxu1 %v282_v34 }
  0x4f   :  { %748 = vmatpush3.msra.mxu0 %v85_v15  ;;  %784 = vmatpush3.msra.mxu1 %v282_v34 }
  0x50   :  { %749 = vmatprep.subr.mxu0 %v84_v16  ;;  %785 = vmatprep.subr.mxu1 %v281_v35 }
  0x51   :  { %750 = vmatpush3.msra.mxu0 %v84_v16  ;;  %786 = vmatpush3.msra.mxu1 %v281_v35 }
  0x52   :  { %752 = vmatmul.mubr.f32.vlgmr.msra.gmra.mxu0 %v1126_v17  ;;  %787 = vmatprep.subr.mxu1 %v280_v36 }
  0x53   :  { %754 = vmatprep.mubr.f32.mxu0 %v1128_v18  ;;  %788 = vmatpush3.msra.mxu1 %v280_v36 }
  0x54   :  { %789 = vmatprep.subr.mxu1 %v279_v37 }
  0x55   :  { %790 = vmatpush3.msra.mxu1 %v279_v37 }
  0x56   :  { %755 = vmatmul.mubr.f32.gmra.mxu0 %v1132_v19  ;;  %791 = vmatprep.subr.mxu1 %v278_v38 }
  0x57   :  { %757 = vmatprep.mubr.f32.mxu0 %v1134_v20  ;;  %792 = vmatpush3.msra.mxu1 %v278_v38 }
  0x58   :  { %793 = vmatprep.subr.mxu1 %v277_v39 }
  0x59   :  { %794 = vmatpush3.msra.mxu1 %v277_v39 }
  0x5a   :  { %758 = vmatmul.mubr.f32.gmra.mxu0 %v1138_v21 }
  0x5b   :  { %760 = vmatprep.mubr.f32.mxu0 %v1140_v22 }
  0x5e   :  { %761 = vmatmul.mubr.f32.gmra.mxu0 %v1144_v23 }
 0x112   :  { %v753_v41 = vpop.f32.mrf.mxu0 }
 0x113   :  { %v179_v42 = vadd.f32 %v753_v41, %v628_v40 }
 0x114   :  { %v173_v43 = vpop.f32.mrf.mxu0 }
 0x115   :  { %v630_v44 = vmul.f32 -1.442695, %v179_v42  ;;  %v174_v45 = vadd.f32 %v628_v40, %v173_v43 }
 0x116   :  { %v756_v46 = vpop.f32.mrf.mxu0 }
 0x117   :  { %890 = vpow2.f32 %v630_v44  ;;  %v629_v47 = vmul.f32 -1.442695, %v174_v45  ;;  %v189_v48 = vadd.f32 %v756_v46, %v628_v40  ;;  %v480_v46 = vld [vmem:[#allocation8 + $0x50] sm:$0xff] }
 0x118   :  { %v183_v49 = vpop.f32.mrf.mxu0 }
 0x119   :  { %892 = vpow2.f32 %v629_v47  ;;  %v632_v50 = vmul.f32 -1.442695, %v189_v48  ;;  %v184_v51 = vadd.f32 %v628_v40, %v183_v49  ;;  %v479_v47 = vld [vmem:[#allocation8 + $0x48] sm:$0xff]  ;;  %v477_v49 = vld [vmem:[#allocation8 + $0x38] sm:$0xff] }
 0x11a   :  { %v759_v52 = vpop.f32.mrf.mxu0 }
 0x11b   :  { %894 = vpow2.f32 %v632_v50  ;;  %v631_v53 = vmul.f32 -1.442695, %v184_v51  ;;  %v199_v54 = vadd.f32 %v759_v52, %v628_v40  ;;  %v476_v50 = vld [vmem:[#allocation8 + $0x30] sm:$0xff]  ;;  %v474_v52 = vld [vmem:[#allocation8 + $0x20] sm:$0xff] }
 0x11c   :  { %v193_v55 = vpop.f32.mrf.mxu0 }
 0x11d   :  { %896 = vpow2.f32 %v631_v53  ;;  %v634_v56 = vmul.f32 -1.442695, %v199_v54  ;;  %v194_v57 = vadd.f32 %v628_v40, %v193_v55  ;;  %v473_v53 = vld [vmem:[#allocation8 + $0x18] sm:$0xff]  ;;  %v471_v55 = vld [vmem:[#allocation8 + $0x8] sm:$0xff] }
 0x11e   :  { %v762_v58 = vpop.f32.mrf.mxu0 }
 0x11f   :  { %898 = vpow2.f32 %v634_v56  ;;  %v633_v59 = vmul.f32 -1.442695, %v194_v57  ;;  %v209_v60 = vadd.f32 %v762_v58, %v628_v40  ;;  %v470_v56 = vld [vmem:[#allocation8] sm:$0xff] }
 0x120   :  { %v203_v61 = vpop.f32.mrf.mxu0 }
 0x121   :  { %900 = vpow2.f32 %v633_v59  ;;  %v636_v62 = vmul.f32 -1.442695, %v209_v60  ;;  %v204_v63 = vadd.f32 %v628_v40, %v203_v61 }
 0x123   :  { %902 = vpow2.f32 %v636_v62  ;;  %v635_v0 = vmul.f32 -1.442695, %v204_v63 }
 0x124   :  { %v891_v1 = vpop.eup %890 }
 0x125   :  { %v237_v2 = vadd.f32 1.0, %v891_v1  ;;  %904 = vpow2.f32 %v635_v0 }
 0x126   :  { %v893_v3 = vpop.eup %892 }
 0x127   :  { %906 = vrcp.f32 %v237_v2  ;;  %v236_v5 = vadd.f32 1.0, %v893_v3 }
 0x128   :  { %v895_v6 = vpop.eup %894 }
 0x129   :  { %908 = vrcp.f32 %v236_v5  ;;  %v239_v7 = vadd.f32 1.0, %v895_v6 }
 0x12a   :  { %v897_v8 = vpop.eup %896 }
 0x12b   :  { %910 = vrcp.f32 %v239_v7  ;;  %v238_v9 = vadd.f32 1.0, %v897_v8 }
 0x12c   :  { %v899_v10 = vpop.eup %898 }
 0x12d   :  { %912 = vrcp.f32 %v238_v9  ;;  %v241_v11 = vadd.f32 1.0, %v899_v10 }
 0x12e   :  { %v901_v12 = vpop.eup %900 }
 0x12f   :  { %914 = vrcp.f32 %v241_v11  ;;  %v240_v13 = vadd.f32 1.0, %v901_v12 }
 0x130   :  { %v903_v14 = vpop.eup %902 }
 0x131   :  { %916 = vrcp.f32 %v240_v13  ;;  %v243_v15 = vadd.f32 1.0, %v903_v14 }
 0x132   :  { %v905_v16 = vpop.eup %904 }
 0x133   :  { %918 = vrcp.f32 %v243_v15  ;;  %v242_v24 = vadd.f32 1.0, %v905_v16 }
 0x134   :  { %v907_v25 = vpop.eup %906 }
 0x135   :  { %920 = vrcp.f32 %v242_v24  ;;  %v261_v27 = vmul.f32 %v907_v25, %v179_v42 }
 0x136   :  { %v909_v26 = vpop.eup %908 }
 0x137   :  { %v260_v28 = vmul.f32 %v909_v26, %v174_v45  ;;  %v1154_v33 = vadd.f32 %v261_v27, %v1126_v17  ;;  %v483_v45 = vld [vmem:[#allocation8 + $0x68] sm:$0xff] }
 0x138   :  { %v911_v29 = vpop.eup %910 }
 0x139   :  { %v1151_v30 = vadd.f32 %v260_v28, %v1123_v4  ;;  %v263_v32 = vmul.f32 %v911_v29, %v189_v48  ;;  %v478_v48 = vld [vmem:[#allocation8 + $0x40] sm:$0xff] }
 0x13a   :  { %v913_v31 = vpop.eup %912 }
 0x13b   :  { %v262_v34 = vmul.f32 %v913_v31, %v184_v51  ;;  %795 = vmatprep.mubr.f32.mxu1 %v1151_v30  ;;  %v1162_v39 = vadd.f32 %v263_v32, %v1132_v19  ;;  %v475_v51 = vld [vmem:[#allocation8 + $0x28] sm:$0xff] }
 0x13c   :  { %v915_v35 = vpop.eup %914  ;;  %796 = vmatmul.mubr.f32.vlgmr.msra.gmra.mxu1 %v1154_v33 }
 0x13d   :  { %v1159_v36 = vadd.f32 %v262_v34, %v1128_v18  ;;  %v265_v38 = vmul.f32 %v915_v35, %v199_v54  ;;  %v472_v54 = vld [vmem:[#allocation8 + $0x10] sm:$0xff] }
 0x13e   :  { %v917_v37 = vpop.eup %916 }
 0x13f   :  { %v264_v4 = vmul.f32 %v917_v37, %v194_v57  ;;  %798 = vmatprep.mubr.f32.mxu1 %v1159_v36  ;;  %v1170_v43 = vadd.f32 %v265_v38, %v1138_v21  ;;  %v484_v21 = vld [vmem:[#allocation8 + $0x70] sm:$0xff] }
 0x140   :  { %v919_v40 = vpop.eup %918  ;;  %799 = vmatmul.mubr.f32.gmra.mxu1 %v1162_v39  ;;  %v638_v57 = vld [vmem:[%s1202_s3 + $0x1] ss:$0 sm:$0xff]  ;;  %s1068_s3 = smov [#allocation10]  }
 0x141   :  { %v1167_v17 = vadd.f32 %v264_v4, %v1134_v20  ;;  %v267_v42 = vmul.f32 %v919_v40, %v209_v60  ;;  %v485_v20 = vld [vmem:[#allocation8 + $0x78] sm:$0xff]  ;;  %s614_s15 = sshll.u32 %s1068_s3, 4  ;;  %s615_s15 = int_to_ptr.vmem [resolvable:$true] %s614_s15 }
 0x142   :  { %v921_v41 = vpop.eup %920  ;;  %807 = vmatprep.subr.mxu0 %v485_v20  ;;  %851 = vmatprep.subr.mxu1 %v485_v20  ;;  %s1034_s16 = scalar_lea.vmem %s615_s15, 1024  ;;  %p1039_p7 = scmp.lt.s32.totalorder %s615_s15, %s615_s15 }
 0x143   :  { %v266_v18 = vmul.f32 %v921_v41, %v204_v63  ;;  %801 = vmatprep.mubr.f32.mxu1 %v1167_v17  ;;  %v1178_v44 = vadd.f32 %v267_v42, %v1144_v23  ;;  %808 = vmatpush3.msra.mxu0 %v485_v20  ;;  %v481_v23 = vld [vmem:[#allocation8 + $0x58] sm:$0xff]  ;;  %p1035_p6 = scmp.ne.s32.totalorder %s615_s15, %s1034_s16  ;;  %p1040_p8 = scmp.lt.s32.totalorder %s1034_s16, %s1034_s16 }
 0x144   :  { %802 = vmatmul.mubr.f32.gmra.mxu1 %v1170_v43  ;;  %809 = vmatprep.subr.mxu0 %v484_v21 }
 0x145   :  { %v1175_v19 = vadd.f32 %v266_v18, %v1140_v22  ;;  %867 = vmatpush3.msra.mxu1 %v485_v20  ;;  %810 = vmatpush3.msra.mxu0 %v484_v21  ;;  %v482_v22 = vld [vmem:[#allocation8 + $0x60] sm:$0xff]  ;;  %p1041_p9 = por %p1040_p8, %p1039_p7 }
 0x146   :  { %852 = vmatprep.subr.mxu1 %v484_v21  ;;  %811 = vmatprep.subr.mxu0 %v483_v45 }
 0x147   :  { %804 = vmatprep.mubr.f32.mxu1 %v1175_v19  ;;  %868 = vmatpush3.msra.mxu1 %v484_v21  ;;  %p1042_p10 = pnand %p1041_p9, %p1035_p6 }
 0x148   :  { %805 = vmatmul.mubr.f32.gmra.mxu1 %v1178_v44  ;;  %853 = vmatprep.subr.mxu1 %v483_v45 }
 0x149   :  { %812 = vmatpush3.msra.mxu0 %v483_v45  ;;  %869 = vmatpush3.msra.mxu1 %v483_v45 }
 0x14a   :  { %813 = vmatprep.subr.mxu0 %v482_v22  ;;  %854 = vmatprep.subr.mxu1 %v482_v22 }
 0x14b   :  { %814 = vmatpush3.msra.mxu0 %v482_v22  ;;  %870 = vmatpush3.msra.mxu1 %v482_v22 }
 0x14c   :  { %815 = vmatprep.subr.mxu0 %v481_v23  ;;  %855 = vmatprep.subr.mxu1 %v481_v23 }
 0x14d   :  { %816 = vmatpush3.msra.mxu0 %v481_v23  ;;  %871 = vmatpush3.msra.mxu1 %v481_v23 }
 0x14e   :  { %817 = vmatprep.subr.mxu0 %v480_v46  ;;  %856 = vmatprep.subr.mxu1 %v480_v46 }
 0x14f   :  { %818 = vmatpush3.msra.mxu0 %v480_v46  ;;  %872 = vmatpush3.msra.mxu1 %v480_v46 }
 0x150   :  { %819 = vmatprep.subr.mxu0 %v479_v47  ;;  %857 = vmatprep.subr.mxu1 %v479_v47 }
 0x151   :  { %820 = vmatpush3.msra.mxu0 %v479_v47  ;;  %873 = vmatpush3.msra.mxu1 %v479_v47 }
 0x152   :  { %821 = vmatprep.subr.mxu0 %v478_v48  ;;  %858 = vmatprep.subr.mxu1 %v478_v48 }
 0x153   :  { %822 = vmatpush3.msra.mxu0 %v478_v48  ;;  %874 = vmatpush3.msra.mxu1 %v478_v48 }
 0x154   :  { %823 = vmatprep.subr.mxu0 %v477_v49  ;;  %859 = vmatprep.subr.mxu1 %v477_v49 }
 0x155   :  { %824 = vmatpush3.msra.mxu0 %v477_v49  ;;  %875 = vmatpush3.msra.mxu1 %v477_v49 }
 0x156   :  { %825 = vmatprep.subr.mxu0 %v476_v50  ;;  %860 = vmatprep.subr.mxu1 %v476_v50 }
 0x157   :  { %826 = vmatpush3.msra.mxu0 %v476_v50  ;;  %876 = vmatpush3.msra.mxu1 %v476_v50 }
 0x158   :  { %827 = vmatprep.subr.mxu0 %v475_v51  ;;  %861 = vmatprep.subr.mxu1 %v475_v51 }
 0x159   :  { %828 = vmatpush3.msra.mxu0 %v475_v51  ;;  %877 = vmatpush3.msra.mxu1 %v475_v51 }
 0x15a   :  { %829 = vmatprep.subr.mxu0 %v474_v52  ;;  %862 = vmatprep.subr.mxu1 %v474_v52 }
 0x15b   :  { %830 = vmatpush3.msra.mxu0 %v474_v52  ;;  %878 = vmatpush3.msra.mxu1 %v474_v52 }
 0x15c   :  { %831 = vmatprep.subr.mxu0 %v473_v53  ;;  %863 = vmatprep.subr.mxu1 %v473_v53 }
 0x15d   :  { %832 = vmatpush3.msra.mxu0 %v473_v53  ;;  %879 = vmatpush3.msra.mxu1 %v473_v53 }
 0x15e   :  { %833 = vmatprep.subr.mxu0 %v472_v54  ;;  %864 = vmatprep.subr.mxu1 %v472_v54 }
 0x15f   :  { %834 = vmatpush3.msra.mxu0 %v472_v54  ;;  %880 = vmatpush3.msra.mxu1 %v472_v54 }
 0x160   :  { %835 = vmatprep.subr.mxu0 %v471_v55  ;;  %865 = vmatprep.subr.mxu1 %v471_v55 }
 0x161   :  { %836 = vmatpush3.msra.mxu0 %v471_v55  ;;  %881 = vmatpush3.msra.mxu1 %v471_v55 }
 0x162   :  { %837 = vmatprep.subr.mxu0 %v470_v56  ;;  %866 = vmatprep.subr.mxu1 %v470_v56 }
 0x163   :  { %838 = vmatpush3.msra.mxu0 %v470_v56  ;;  %882 = vmatpush3.msra.mxu1 %v470_v56 }
 0x1fc   :  { %v797_v58 = vpop.f32.mrf.mxu1 }
 0x1fd   :  { %v373_v59 = vadd.f32 %v797_v58, %v638_v57 }
 0x1fe   :  { %v367_v60 = vpop.f32.mrf.mxu1 }
 0x1ff   :  { %v640_v61 = vmul.f32 -1.442695, %v373_v59  ;;  %v368_v62 = vadd.f32 %v638_v57, %v367_v60 }
 0x200   :  { %v800_v63 = vpop.f32.mrf.mxu1 }
 0x201   :  { %922 = vpow2.f32 %v640_v61  ;;  %v639_v0 = vmul.f32 -1.442695, %v368_v62  ;;  %v383_v1 = vadd.f32 %v800_v63, %v638_v57 }
 0x202   :  { %v377_v2 = vpop.f32.mrf.mxu1 }
 0x203   :  { %924 = vpow2.f32 %v639_v0  ;;  %v642_v3 = vmul.f32 -1.442695, %v383_v1  ;;  %v378_v5 = vadd.f32 %v638_v57, %v377_v2  ;;  %v591_v0 = vld [vmem:[#allocation5] sm:$0xff] }
 0x204   :  { %v803_v6 = vpop.f32.mrf.mxu1 }
 0x205   :  { %926 = vpow2.f32 %v642_v3  ;;  %v641_v7 = vmul.f32 -1.442695, %v378_v5  ;;  %v393_v8 = vadd.f32 %v803_v6, %v638_v57 }
 0x206   :  { %v387_v9 = vpop.f32.mrf.mxu1 }
 0x207   :  { %928 = vpow2.f32 %v641_v7  ;;  %v644_v10 = vmul.f32 -1.442695, %v393_v8  ;;  %v388_v11 = vadd.f32 %v638_v57, %v387_v9 }
 0x208   :  { %v806_v12 = vpop.f32.mrf.mxu1 }
 0x209   :  { %930 = vpow2.f32 %v644_v10  ;;  %v643_v13 = vmul.f32 -1.442695, %v388_v11  ;;  %v403_v14 = vadd.f32 %v806_v12, %v638_v57 }
 0x20a   :  { %v397_v15 = vpop.f32.mrf.mxu1 }
 0x20b   :  { %932 = vpow2.f32 %v643_v13  ;;  %v646_v16 = vmul.f32 -1.442695, %v403_v14  ;;  %v398_v24 = vadd.f32 %v638_v57, %v397_v15 }
 0x20d   :  { %934 = vpow2.f32 %v646_v16  ;;  %v645_v25 = vmul.f32 -1.442695, %v398_v24 }
 0x20e   :  { %v923_v26 = vpop.eup %922 }
 0x20f   :  { %v431_v27 = vadd.f32 1.0, %v923_v26  ;;  %936 = vpow2.f32 %v645_v25 }
 0x210   :  { %v925_v28 = vpop.eup %924 }
 0x211   :  { %938 = vrcp.f32 %v431_v27  ;;  %v430_v29 = vadd.f32 1.0, %v925_v28 }
 0x212   :  { %v927_v31 = vpop.eup %926 }
 0x213   :  { %940 = vrcp.f32 %v430_v29  ;;  %v433_v32 = vadd.f32 1.0, %v927_v31 }
 0x214   :  { %v929_v34 = vpop.eup %928 }
 0x215   :  { %942 = vrcp.f32 %v433_v32  ;;  %v432_v35 = vadd.f32 1.0, %v929_v34 }
 0x216   :  { %v931_v37 = vpop.eup %930 }
 0x217   :  { %944 = vrcp.f32 %v432_v35  ;;  %v435_v38 = vadd.f32 1.0, %v931_v37 }
 0x218   :  { %v933_v4 = vpop.eup %932 }
 0x219   :  { %946 = vrcp.f32 %v435_v38  ;;  %v434_v40 = vadd.f32 1.0, %v933_v4 }
 0x21a   :  { %v935_v41 = vpop.eup %934 }
 0x21b   :  { %948 = vrcp.f32 %v434_v40  ;;  %v437_v42 = vadd.f32 1.0, %v935_v41 }
 0x21c   :  { %v937_v18 = vpop.eup %936 }
 0x21d   :  { %950 = vrcp.f32 %v437_v42  ;;  %v436_v20 = vadd.f32 1.0, %v937_v18 }
 0x21e   :  { %v939_v21 = vpop.eup %938 }
 0x21f   :  { %952 = vrcp.f32 %v436_v20  ;;  %v455_v22 = vmul.f32 %v939_v21, %v373_v59 }
 0x220   :  { %v941_v45 = vpop.eup %940 }
 0x221   :  { %v454_v23 = vmul.f32 %v941_v45, %v368_v62  ;;  %v463_v49 = vadd.f32 %v455_v22, %v1154_v33 }
 0x222   :  { %v943_v46 = vpop.eup %942 }
 0x223   :  { %v462_v47 = vadd.f32 %v454_v23, %v1151_v30  ;;  %v457_v50 = vmul.f32 %v943_v46, %v383_v1 }
 0x224   :  { %v945_v48 = vpop.eup %944 }
 0x225   :  { %v456_v51 = vmul.f32 %v945_v48, %v378_v5  ;;  %839 = vmatprep.mubr.f32.mxu0 %v462_v47  ;;  %v465_v56 = vadd.f32 %v457_v50, %v1162_v39  ;;  %v592_v39 = vld [vmem:[#allocation5 + $0x8] sm:$0xff] }
 0x226   :  { %v947_v52 = vpop.eup %946  ;;  %840 = vmatmul.mubr.f32.vlgmr.msra.gmra.mxu0 %v463_v49 }
 0x227   :  { %v464_v53 = vadd.f32 %v456_v51, %v1159_v36  ;;  %v459_v55 = vmul.f32 %v947_v52, %v393_v8 }
 0x228   :  { %v949_v54 = vpop.eup %948 }
 0x229   :  { %v458_v57 = vmul.f32 %v949_v54, %v388_v11  ;;  %842 = vmatprep.mubr.f32.mxu0 %v464_v53  ;;  %v467_v33 = vadd.f32 %v459_v55, %v1170_v43 }
 0x22a   :  { %v951_v58 = vpop.eup %950  ;;  %843 = vmatmul.mubr.f32.gmra.mxu0 %v465_v56 }
 0x22b   :  { %v466_v30 = vadd.f32 %v458_v57, %v1167_v17  ;;  %v461_v60 = vmul.f32 %v951_v58, %v403_v14 }
 0x22c   :  { %v953_v59 = vpop.eup %952 }
 0x22d   :  { %v460_v61 = vmul.f32 %v953_v59, %v398_v24  ;;  %845 = vmatprep.mubr.f32.mxu1 %v466_v30  ;;  %v469_v36 = vadd.f32 %v461_v60, %v1178_v44 }
 0x22e   :  { %846 = vmatmul.mubr.f32.vlgmr.msra.gmra.mxu1 %v467_v33 }
 0x22f   :  { %v468_v62 = vadd.f32 %v460_v61, %v1175_v19 }
 0x231   :  { %848 = vmatprep.mubr.f32.mxu1 %v468_v62 }
 0x232   :  { %849 = vmatmul.mubr.f32.gmra.mxu1 %v469_v36 }
 0x2e6   :  { %v841_v63 = vpop.f32.mrf.mxu0 }
 0x2e7   :  { %v594_v1 = vadd.f32 %v841_v63, %v592_v39 }
 0x2e8   :  { %v552_v2 = vpop.f32.mrf.mxu0 }
 0x2e9   :  { %596 = vst [vmem:[#allocation10 + $0x8] sm:$0xff] %v594_v1  ;;  %v593_v17 = vadd.f32 %v591_v0, %v552_v2 }
 0x2ea   :  { %v844_v3 = vpop.f32.mrf.mxu0 }
 0x2eb   :  { %595 = vst [vmem:[#allocation10] sm:$0xff] %v593_v17  ;;  %v598_v43 = vadd.f32 %v844_v3, %v592_v39 }
 0x2ec   :  { %v562_v5 = vpop.f32.mrf.mxu0 }
 0x2ed   :  { %600 = vst [vmem:[#allocation10 + $0x18] sm:$0xff] %v598_v43  ;;  %v597_v6 = vadd.f32 %v591_v0, %v562_v5 }
 0x2ee   :  { %v847_v7 = vpop.f32.mrf.mxu1 }
 0x2ef   :  { %599 = vst [vmem:[#allocation10 + $0x10] sm:$0xff] %v597_v6  ;;  %v602_v19 = vadd.f32 %v847_v7, %v592_v39 }
 0x2f0   :  { %v572_v8 = vpop.f32.mrf.mxu1 }
 0x2f1   :  { %604 = vst [vmem:[#allocation10 + $0x28] sm:$0xff] %v602_v19  ;;  %v601_v44 = vadd.f32 %v591_v0, %v572_v8 }
 0x2f2   :  { %v850_v9 = vpop.f32.mrf.mxu1 }
 0x2f3   :  { %603 = vst [vmem:[#allocation10 + $0x20] sm:$0xff] %v601_v44  ;;  %v606_v10 = vadd.f32 %v850_v9, %v592_v39 }
 0x2f4   :  { %v582_v11 = vpop.f32.mrf.mxu1 }
 0x2f5   :  { %608 = vst [vmem:[#allocation10 + $0x38] sm:$0xff] %v606_v10  ;;  %v605_v12 = vadd.f32 %v591_v0, %v582_v11 }
 0x2f7   :  { %607 = vst [vmem:[#allocation10 + $0x30] sm:$0xff] %v605_v12 }
 0x2f8   :  { %1045 = shalt.err (!%p1042_p10)
}
 0x2f9   :  { %620 = dma.vmem_to_hbm [thread:$0]  %s615_s15, 1024, %s1204_s5, [#allocation4], %s1064_s23, %s1064_s23, %s1065_s24  }
 0x2fa   :  { %1060 = dma.done.wait [#allocation4], 1024  }
 0x2fb   :  { %1061 = vsyncadd [#allocation4], 4294966272 }
 0x2fc   :  { %624 = vsyncpa [#allocation3], 1 }
 0x2fd   :  { %625 = vsyncpa [#allocation6], 1 }
 0x2fe   :  { %626 = vsyncpa [#allocation9], 1 }
 0x2ff   :  { %627 = vsyncpa [#allocation4], 1 }

</bundles_post_ra>
